<compile_context>
chip_gen: v6e
topology: v6e:2x2x1
jax: 0.10.0
libtpu: 0.0.40
codegen_flags: <defaults>
</compile_context>

<pallas_src>
import jax
import jax.numpy as jnp
from jax.experimental import pallas as pl
from jax.experimental.pallas import tpu as pltpu


def _ceil_to(x, m):
    return ((x + m - 1) // m) * m


def _pick_bm(B):
    """Batch-tile heuristic: big tiles to amortize per-step overhead; once the
    padded batch is >= 128 rows, guarantee >= 2 grid blocks (v7x megacore)."""
    Bp8 = _ceil_to(max(B, 1), 8)
    if Bp8 <= 8:
        return 8
    if Bp8 < 128:
        return Bp8                       # single block; batch too small to split
    nblk = max(2, -(-Bp8 // 256))        # fewest blocks of size <= 256, at least 2
    return _ceil_to(-(-Bp8 // nblk), 8)


# ----------------------------------------------------------------------------
# Fused forward kernel
# ----------------------------------------------------------------------------
def _make_kernel(LP, PP, training):
    """Whole ControlVAE_old forward in one launch.

    Matmuls: bf16 operands on the MXU with f32 accumulation.
    Elementwise epilogues (bias, relu, sigmoid, reparam exp) stay f32 on the
    VPU/EUP.
    """

    def body(x_ref, eps_ref,
             enc_w1, enc_b1, enc_w2, enc_b2, head_w, head_b,
             dec_w1, dec_b1, dec_w2, dec_b2, dec_w3, dec_b3,
             prop_a, prop_b,
             recon_ref, heads_ref):
        f32 = jnp.float32
        bf16 = jnp.bfloat16

        xb = x_ref[...]                                            # (BM, Dp) bf16

        # encoder layer 1 (encoder_z and encoder_w fused side-by-side): [h | g]
        hg = jnp.dot(xb, enc_w1[...], preferred_element_type=f32) + enc_b1[...]
        hg = jnp.maximum(hg, 0.0)
        # encoder layer 2 (block-diagonal): one (BM,2H)x(2H,2H) matmul
        hg = jnp.dot(hg.astype(bf16), enc_w2[...],
                     preferred_element_type=f32) + enc_b2[...]
        hg = jnp.maximum(hg, 0.0)
        # all 5 heads in one matmul: [z_mean | z_logvar | w_mean | w_logvar | p_pred]
        heads = jnp.dot(hg.astype(bf16), head_w[...],
                        preferred_element_type=f32) + head_b[...]

        z_mean = heads[:, 0:LP]
        z_logvar = heads[:, LP:2 * LP]
        w_mean = heads[:, 2 * LP:2 * LP + PP]
        w_logvar = heads[:, 2 * LP + PP:2 * LP + 2 * PP]
        p_pred = heads[:, 2 * LP + 2 * PP:2 * LP + 3 * PP]

        # reparameterize (fused epilogue; exp -> EUP)
        if training:
            eps = eps_ref[...]
            z = z_mean + jnp.exp(0.5 * z_logvar) * eps[:, :LP]
            w = w_mean + jnp.exp(0.5 * w_logvar) * eps[:, LP:LP + PP]
        else:
            z = z_mean
            w = w_mean

        # decoder layer 1: one (BM, LP+PP) x (LP+PP, HID) matmul on concat([z, w])
        zw = jnp.concatenate([z, w], axis=-1).astype(bf16)
        d = jnp.dot(zw, dec_w1[...], preferred_element_type=f32) + dec_b1[...]
        d = jnp.maximum(d, 0.0)
        d = jnp.dot(d.astype(bf16), dec_w2[...],
                    preferred_element_type=f32) + dec_b2[...]
        d = jnp.maximum(d, 0.0)
        recon = jax.nn.sigmoid(
            jnp.dot(d.astype(bf16), dec_w3[...],
                    preferred_element_type=f32) + dec_b3[...])

        # per-property Linear(1,1) head: y_i = a_i * w_i + b_i
        y = w * prop_a[...] + prop_b[...]

        # lane-dense stores: one big recon slab + one packed head slab
        recon_ref[...] = recon
        heads_ref[...] = jnp.concatenate(
            [z_mean, z_logvar, w_mean, w_logvar, p_pred, z, w, y], axis=-1)

    if training:
        def kernel(x_ref, eps_ref, *rest):
            body(x_ref, eps_ref, *rest)
    else:
        def kernel(x_ref, *rest):
            body(x_ref, None, *rest)
    return kernel


# ----------------------------------------------------------------------------
# ControlVAE_old (JAX / Pallas)
# ----------------------------------------------------------------------------
class ControlVAE:
    def __init__(self, img_size, latent_dim, num_prop, hidden=64, seed=0):
        if list(img_size[1:]) not in [[32, 32], [64, 64]]:
            raise RuntimeError(
                "{} sized images not supported. Only (None, 32, 32) and "
                "(None, 64, 64) supported.".format(img_size))
        self.img_size = img_size
        self.latent_dim = latent_dim
        self.num_prop = num_prop
        self.num_pixels = img_size[1] * img_size[2]
        self.hidden = hidden

        C, H, W = img_size
        self.D = C * H * W
        # padded (lane-dense) widths, fixed at init
        self.Dp = _ceil_to(self.D, 128)
        self.HID = _ceil_to(hidden, 128)
        self.LP = _ceil_to(latent_dim, 128)
        self.PP = _ceil_to(num_prop, 128)
        # packed output slab: [z_mean|z_logvar|w_mean|w_logvar|p_pred|z|w|y]
        self.HW_out = 3 * self.LP + 5 * self.PP

        self._init_params(seed)
        self._call_cache = {}

    # -------------------- params (pre-padded + pre-fused once) --------------------
    def _init_params(self, seed):
        D, Dp, HID, LP, PP = self.D, self.Dp, self.HID, self.LP, self.PP
        hid, L, P = self.hidden, self.latent_dim, self.num_prop
        keys = iter(jax.random.split(jax.random.PRNGKey(seed), 16))

        def blk(k, fan_in, fan_out):
            # kaiming-like init (weights_init equivalent); padded region is zero
            return (jax.random.normal(k, (fan_in, fan_out), jnp.float32)
                    * (2.0 / fan_in) ** 0.5)

        # encoder layer 1 fused: x -> [h | g]
        enc_w1 = jnp.zeros((Dp, 2 * HID), jnp.float32)
        enc_w1 = enc_w1.at[:D, :hid].set(blk(next(keys), D, hid))           # ez_w1
        enc_w1 = enc_w1.at[:D, HID:HID + hid].set(blk(next(keys), D, hid))  # ew_w1
        enc_b1 = jnp.zeros((1, 2 * HID), jnp.float32)

        # encoder layer 2 fused block-diagonal
        enc_w2 = jnp.zeros((2 * HID, 2 * HID), jnp.float32)
        enc_w2 = enc_w2.at[:hid, :hid].set(blk(next(keys), hid, hid))                   # ez_w2
        enc_w2 = enc_w2.at[HID:HID + hid, HID:HID + hid].set(blk(next(keys), hid, hid))  # ew_w2
        enc_b2 = jnp.zeros((1, 2 * HID), jnp.float32)

        # all heads fused: [z_mean | z_logvar | w_mean | w_logvar | p_pred]
        HWh = 2 * LP + 3 * PP
        head_w = jnp.zeros((2 * HID, HWh), jnp.float32)
        head_w = head_w.at[:hid, :L].set(blk(next(keys), hid, L))                   # z_mean
        head_w = head_w.at[:hid, LP:LP + L].set(blk(next(keys), hid, L))            # z_logvar
        head_w = head_w.at[HID:HID + hid, 2 * LP:2 * LP + P].set(
            blk(next(keys), hid, P))                                                # w_mean
        head_w = head_w.at[HID:HID + hid, 2 * LP + PP:2 * LP + PP + P].set(
            blk(next(keys), hid, P))                                                # w_logvar
        head_w = head_w.at[HID:HID + hid, 2 * LP + 2 * PP:2 * LP + 2 * PP + P].set(
            blk(next(keys), hid, P))                                                # p_pred
        head_b = jnp.zeros((1, HWh), jnp.float32)

        # decoder layer 1 fused over concat([z, w])
        dec_w1 = jnp.zeros((LP + PP, HID), jnp.float32)
        dec_w1 = dec_w1.at[:L, :hid].set(blk(next(keys), L, hid))            # z part
        dec_w1 = dec_w1.at[LP:LP + P, :hid].set(blk(next(keys), P, hid))     # w part
        dec_b1 = jnp.zeros((1, HID), jnp.float32)

        dec_w2 = jnp.zeros((HID, HID), jnp.float32).at[:hid, :hid].set(
            blk(next(keys), hid, hid))
        dec_b2 = jnp.zeros((1, HID), jnp.float32)
        dec_w3 = jnp.zeros((HID, Dp), jnp.float32).at[:hid, :D].set(
            blk(next(keys), hid, D))
        dec_b3 = jnp.zeros((1, Dp), jnp.float32)

        # decoder.property_lin_list: per-property Linear(1,1) on w[:, i]
        prop_a = jnp.zeros((1, PP), jnp.float32).at[0, :P].set(
            jax.random.normal(next(keys), (P,), jnp.float32))
        prop_b = jnp.zeros((1, PP), jnp.float32)

        bf = jnp.bfloat16
        # exact kernel argument order (bf16 matmul weights, f32 biases/epilogues)
        self._weights = [
            enc_w1.astype(bf), enc_b1, enc_w2.astype(bf), enc_b2,
            head_w.astype(bf), head_b,
            dec_w1.astype(bf), dec_b1, dec_w2.astype(bf), dec_b2,
            dec_w3.astype(bf), dec_b3, prop_a, prop_b,
        ]

    # -------------------------- pallas_call builder (cached) --------------------------
    def _build_call(self, Bp, BM, training):
        Dp, LP, PP, HID, HW = self.Dp, self.LP, self.PP, self.HID, self.HW_out
        nblk = Bp // BM

        def row_spec(cols):
            return pl.BlockSpec((BM, cols), lambda i: (i, 0))

        def const_spec(shape):
            return pl.BlockSpec(shape, lambda i: (0,) * len(shape))

        in_specs = [row_spec(Dp)]
        if training:
            in_specs.append(row_spec(LP + PP))
        in_specs += [const_spec(tuple(w.shape)) for w in self._weights]

        out_shape = (
            jax.ShapeDtypeStruct((Bp, Dp), jnp.float32),   # reconstruct (flat)
            jax.ShapeDtypeStruct((Bp, HW), jnp.float32),   # packed head slab
        )
        out_specs = (row_spec(Dp), row_spec(HW))

        # advisory cost estimate for the XLA scheduler
        H2 = 2 * HID
        macs = (Dp * H2 + H2 * H2 + H2 * (2 * LP + 3 * PP)
                + (LP + PP) * HID + HID * HID + HID * Dp)
        flops = 2 * Bp * macs
        transcendentals = Bp * (Dp + (2 * (LP + PP) if training else 0))
        weight_bytes = sum(int(w.size) * w.dtype.itemsize for w in self._weights)
        io_bytes = Bp * (Dp * 2 + Dp * 4 + HW * 4
                         + ((LP + PP) * 4 if training else 0))

        # scoped-VMEM request sized from the actual (double-buffered) footprint
        tile_io = BM * (Dp * 2 + Dp * 4 + HW * 4
                        + ((LP + PP) * 4 if training else 0))
        vmem_limit = int(min(64 * 2 ** 20,
                             max(12 * 2 ** 20,
                                 2 * weight_bytes + 2 * tile_io + 2 * 2 ** 20)))

        kernel = _make_kernel(LP, PP, training)
        return pl.pallas_call(
            kernel,
            grid=(nblk,),
            in_specs=in_specs,
            out_specs=out_specs,
            out_shape=out_shape,
            compiler_params=pltpu.CompilerParams(
                dimension_semantics=("parallel",),
                vmem_limit_bytes=vmem_limit),
            cost_estimate=pl.CostEstimate(
                flops=int(flops),
                transcendentals=int(transcendentals),
                bytes_accessed=int(weight_bytes + io_bytes)),
        )

    # -------------------------- forward --------------------------
    def forward(self, x, p=None, training=False, rng=None):
        # TODO(synk): `p` is accepted for API parity with encoder_w(x, p), but the
        # deterministic MLP encoder_w used here does not condition on it.
        B = x.shape[0]
        C, H, W = self.img_size
        L, P = self.latent_dim, self.num_prop
        D, Dp, LP, PP = self.D, self.Dp, self.LP, self.PP

        BM = _pick_bm(B)
        Bp = _ceil_to(B, BM)

        x_flat = x.reshape(B, -1).astype(jnp.float32)        # NCHW row-major flatten
        # bf16 input stream: the kernel MXU path is bf16 anyway
        x_pad = jnp.pad(x_flat, ((0, Bp - B), (0, Dp - D))).astype(jnp.bfloat16)

        args = [x_pad]
        if training:
            if rng is None:
                raise ValueError("training=True requires an rng key")
            rz, rw = jax.random.split(rng)
            # TODO(synk): eps could be drawn in-kernel (pltpu.prng_seed +
            # prng_random_bits + Box-Muller); host-side normals keep exact N(0,1)
            # semantics and are only present on the training path.
            eps = jnp.zeros((Bp, LP + PP), jnp.float32)
            eps = eps.at[:B, :L].set(jax.random.normal(rz, (B, L), jnp.float32))
            eps = eps.at[:B, LP:LP + P].set(jax.random.normal(rw, (B, P), jnp.float32))
            args.append(eps)
        args += self._weights

        key = (Bp, BM, bool(training))
        call = self._call_cache.get(key)
        if call is None:
            call = self._build_call(Bp, BM, bool(training))
            self._call_cache[key] = call

        recon_p, heads_p = call(*args)

        reconstruct = recon_p[:B, :D].reshape(B, C, H, W)
        z_mean = heads_p[:B, 0:L]
        z_logvar = heads_p[:B, LP:LP + L]
        w_mean = heads_p[:B, 2 * LP:2 * LP + P]
        w_logvar = heads_p[:B, 2 * LP + PP:2 * LP + PP + P]
        p_pred = heads_p[:B, 2 * LP + 2 * PP:2 * LP + 2 * PP + P]
        latent_sample_z = heads_p[:B, 2 * LP + 3 * PP:2 * LP + 3 * PP + L]
        latent_sample_w = heads_p[:B, 3 * LP + 3 * PP:3 * LP + 3 * PP + P]
        y_reconstruct = heads_p[:B, 3 * LP + 4 * PP:3 * LP + 4 * PP + P]

        return ((reconstruct, y_reconstruct), (z_mean, z_logvar),
                (w_mean, w_logvar), latent_sample_z, latent_sample_w, p_pred)

    def sample_latent(self, x, p=None, training=False, rng=None):
        # Reuses the fused forward (decoder output discarded); encoders + reparam
        # semantics identical to the reference sample_latent.
        out = self.forward(x, p=p, training=training, rng=rng)
        return out[3], out[4]

    # TODO(synk): ControlVAE.iterate_get_w is a host-side iterative solver with
    # CUDA-specific moves/prints; not part of the device forward pass, left out.


# ----------------------------------------------------------------------------
if __name__ == "__main__":
    key = jax.random.PRNGKey(0)
    k_x, k_rng = jax.random.split(key)

    B, C, H, W = 4, 1, 32, 32          # small, supported img_size (None, 32, 32)
    latent_dim, num_prop = 8, 2
    x = jax.random.uniform(k_x, (B, C, H, W), jnp.float32)

    model = ControlVAE((C, H, W), latent_dim, num_prop, hidden=64, seed=0)

    # eval-mode forward (reparameterize returns the mean; no eps kernel input)
    out_eval = model.forward(x, training=False)
    # training-mode forward (exercises the fused reparameterization path)
    out_train = model.forward(x, training=True, rng=k_rng)

    (recon, y_recon), (zm, zlv), (wm, wlv), zs, ws, p_pred = out_eval
    jax.block_until_ready(recon)
    jax.block_until_ready(out_train[0][0])

    assert recon.shape == (B, C, H, W)
    assert y_recon.shape == (B, num_prop)
    assert zm.shape == (B, latent_dim) and zlv.shape == (B, latent_dim)
    assert wm.shape == (B, num_prop) and wlv.shape == (B, num_prop)
    assert p_pred.shape == (B, num_prop)
    # eval-mode latent samples must equal the means
    assert bool(jnp.allclose(zs, zm)) and bool(jnp.allclose(ws, wm))
    # training-mode samples differ from the means (std * eps != 0 w.h.p.)
    assert not bool(jnp.allclose(out_train[3], out_train[1][0]))

    print("KERNEL_OK")
</pallas_src>

<mosaic_0001>
module attributes {stable_mosaic.version = 11 : i64} {
  func.func @kernel(%arg0: i32, %arg1: memref<8x1024xbf16, #tpu.memory_space<vmem>>, %arg2: memref<1024x256xbf16, #tpu.memory_space<vmem>>, %arg3: memref<1x256xf32, #tpu.memory_space<vmem>>, %arg4: memref<256x256xbf16, #tpu.memory_space<vmem>>, %arg5: memref<1x256xf32, #tpu.memory_space<vmem>>, %arg6: memref<256x640xbf16, #tpu.memory_space<vmem>>, %arg7: memref<1x640xf32, #tpu.memory_space<vmem>>, %arg8: memref<256x128xbf16, #tpu.memory_space<vmem>>, %arg9: memref<1x128xf32, #tpu.memory_space<vmem>>, %arg10: memref<128x128xbf16, #tpu.memory_space<vmem>>, %arg11: memref<1x128xf32, #tpu.memory_space<vmem>>, %arg12: memref<128x1024xbf16, #tpu.memory_space<vmem>>, %arg13: memref<1x1024xf32, #tpu.memory_space<vmem>>, %arg14: memref<1x128xf32, #tpu.memory_space<vmem>>, %arg15: memref<1x128xf32, #tpu.memory_space<vmem>>, %arg16: memref<8x1024xf32, #tpu.memory_space<vmem>>, %arg17: memref<8x1024xf32, #tpu.memory_space<vmem>>) attributes {dimension_semantics = [#tpu.dimension_semantics<parallel>], iteration_bounds = array<i64: 1>, scalar_prefetch = 0 : i64, scratch_operands = 0 : i64, tpu.core_type = #tpu.core_type<tc>, window_params = [{transform_indices = @transform_0, window_bounds = array<i64: 8, 1024>}, {pipeline_mode = #tpu.pipeline_mode<synchronous>, transform_indices = @transform_1, window_bounds = array<i64: 1024, 256>}, {pipeline_mode = #tpu.pipeline_mode<synchronous>, transform_indices = @transform_2, window_bounds = array<i64: 1, 256>}, {pipeline_mode = #tpu.pipeline_mode<synchronous>, transform_indices = @transform_3, window_bounds = array<i64: 256, 256>}, {pipeline_mode = #tpu.pipeline_mode<synchronous>, transform_indices = @transform_4, window_bounds = array<i64: 1, 256>}, {pipeline_mode = #tpu.pipeline_mode<synchronous>, transform_indices = @transform_5, window_bounds = array<i64: 256, 640>}, {pipeline_mode = #tpu.pipeline_mode<synchronous>, transform_indices = @transform_6, window_bounds = array<i64: 1, 640>}, {pipeline_mode = #tpu.pipeline_mode<synchronous>, transform_indices = @transform_7, window_bounds = array<i64: 256, 128>}, {pipeline_mode = #tpu.pipeline_mode<synchronous>, transform_indices = @transform_8, window_bounds = array<i64: 1, 128>}, {pipeline_mode = #tpu.pipeline_mode<synchronous>, transform_indices = @transform_9, window_bounds = array<i64: 128, 128>}, {pipeline_mode = #tpu.pipeline_mode<synchronous>, transform_indices = @transform_10, window_bounds = array<i64: 1, 128>}, {pipeline_mode = #tpu.pipeline_mode<synchronous>, transform_indices = @transform_11, window_bounds = array<i64: 128, 1024>}, {pipeline_mode = #tpu.pipeline_mode<synchronous>, transform_indices = @transform_12, window_bounds = array<i64: 1, 1024>}, {pipeline_mode = #tpu.pipeline_mode<synchronous>, transform_indices = @transform_13, window_bounds = array<i64: 1, 128>}, {pipeline_mode = #tpu.pipeline_mode<synchronous>, transform_indices = @transform_14, window_bounds = array<i64: 1, 128>}, {transform_indices = @transform_15, window_bounds = array<i64: 8, 1024>}, {transform_indices = @transform_16, window_bounds = array<i64: 8, 1024>}]} {
    %c0 = arith.constant 0 : index
    %c0_0 = arith.constant 0 : index
    %0 = vector.load %arg1[%c0, %c0_0] : memref<8x1024xbf16, #tpu.memory_space<vmem>>, vector<8x1024xbf16>
    %c0_1 = arith.constant 0 : index
    %c0_2 = arith.constant 0 : index
    %1 = vector.load %arg2[%c0_1, %c0_2] : memref<1024x256xbf16, #tpu.memory_space<vmem>>, vector<1024x256xbf16>
    %cst = arith.constant dense<0.000000e+00> : vector<8x256xf32>
    %2 = tpu.matmul %0, %1, %cst {dimension_numbers = #tpu.dot_dimension_numbers<[1], [0], [0], [1], [0, 0, 1, 1], [], []>} : vector<8x1024xbf16>, vector<1024x256xbf16>, vector<8x256xf32> -> vector<8x256xf32>
    %c0_3 = arith.constant 0 : index
    %c0_4 = arith.constant 0 : index
    %3 = vector.load %arg3[%c0_3, %c0_4] : memref<1x256xf32, #tpu.memory_space<vmem>>, vector<1x256xf32>
    %4 = vector.broadcast %3 : vector<1x256xf32> to vector<8x256xf32>
    %5 = arith.addf %2, %4 : vector<8x256xf32>
    %cst_5 = arith.constant 0.000000e+00 : f32
    %6 = vector.broadcast %cst_5 : f32 to vector<8x256xf32>
    %7 = arith.maximumf %5, %6 : vector<8x256xf32>
    %8 = arith.truncf %7 : vector<8x256xf32> to vector<8x256xbf16>
    %c0_6 = arith.constant 0 : index
    %c0_7 = arith.constant 0 : index
    %9 = vector.load %arg4[%c0_6, %c0_7] : memref<256x256xbf16, #tpu.memory_space<vmem>>, vector<256x256xbf16>
    %cst_8 = arith.constant dense<0.000000e+00> : vector<8x256xf32>
    %10 = tpu.matmul %8, %9, %cst_8 {dimension_numbers = #tpu.dot_dimension_numbers<[1], [0], [0], [1], [0, 0, 1, 1], [], []>} : vector<8x256xbf16>, vector<256x256xbf16>, vector<8x256xf32> -> vector<8x256xf32>
    %c0_9 = arith.constant 0 : index
    %c0_10 = arith.constant 0 : index
    %11 = vector.load %arg5[%c0_9, %c0_10] : memref<1x256xf32, #tpu.memory_space<vmem>>, vector<1x256xf32>
    %12 = vector.broadcast %11 : vector<1x256xf32> to vector<8x256xf32>
    %13 = arith.addf %10, %12 : vector<8x256xf32>
    %cst_11 = arith.constant 0.000000e+00 : f32
    %14 = vector.broadcast %cst_11 : f32 to vector<8x256xf32>
    %15 = arith.maximumf %13, %14 : vector<8x256xf32>
    %16 = arith.truncf %15 : vector<8x256xf32> to vector<8x256xbf16>
    %c0_12 = arith.constant 0 : index
    %c0_13 = arith.constant 0 : index
    %17 = vector.load %arg6[%c0_12, %c0_13] : memref<256x640xbf16, #tpu.memory_space<vmem>>, vector<256x640xbf16>
    %cst_14 = arith.constant dense<0.000000e+00> : vector<8x640xf32>
    %18 = tpu.matmul %16, %17, %cst_14 {dimension_numbers = #tpu.dot_dimension_numbers<[1], [0], [0], [1], [0, 0, 1, 1], [], []>} : vector<8x256xbf16>, vector<256x640xbf16>, vector<8x640xf32> -> vector<8x640xf32>
    %c0_15 = arith.constant 0 : index
    %c0_16 = arith.constant 0 : index
    %19 = vector.load %arg7[%c0_15, %c0_16] : memref<1x640xf32, #tpu.memory_space<vmem>>, vector<1x640xf32>
    %20 = vector.broadcast %19 : vector<1x640xf32> to vector<8x640xf32>
    %21 = arith.addf %18, %20 : vector<8x640xf32>
    %22 = vector.extract_strided_slice %21 {offsets = [0, 0], sizes = [8, 128], strides = [1, 1]} : vector<8x640xf32> to vector<8x128xf32>
    %23 = vector.extract_strided_slice %21 {offsets = [0, 128], sizes = [8, 128], strides = [1, 1]} : vector<8x640xf32> to vector<8x128xf32>
    %24 = vector.extract_strided_slice %21 {offsets = [0, 256], sizes = [8, 128], strides = [1, 1]} : vector<8x640xf32> to vector<8x128xf32>
    %25 = vector.extract_strided_slice %21 {offsets = [0, 384], sizes = [8, 128], strides = [1, 1]} : vector<8x640xf32> to vector<8x128xf32>
    %26 = vector.extract_strided_slice %21 {offsets = [0, 512], sizes = [8, 128], strides = [1, 1]} : vector<8x640xf32> to vector<8x128xf32>
    %27 = tpu.concatenate %22, %24 in 1 : vector<8x128xf32>, vector<8x128xf32> -> vector<8x256xf32>
    %28 = arith.truncf %27 : vector<8x256xf32> to vector<8x256xbf16>
    %c0_17 = arith.constant 0 : index
    %c0_18 = arith.constant 0 : index
    %29 = vector.load %arg8[%c0_17, %c0_18] : memref<256x128xbf16, #tpu.memory_space<vmem>>, vector<256x128xbf16>
    %cst_19 = arith.constant dense<0.000000e+00> : vector<8x128xf32>
    %30 = tpu.matmul %28, %29, %cst_19 {dimension_numbers = #tpu.dot_dimension_numbers<[1], [0], [0], [1], [0, 0, 1, 1], [], []>} : vector<8x256xbf16>, vector<256x128xbf16>, vector<8x128xf32> -> vector<8x128xf32>
    %c0_20 = arith.constant 0 : index
    %c0_21 = arith.constant 0 : index
    %31 = vector.load %arg9[%c0_20, %c0_21] : memref<1x128xf32, #tpu.memory_space<vmem>>, vector<1x128xf32>
    %32 = vector.broadcast %31 : vector<1x128xf32> to vector<8x128xf32>
    %33 = arith.addf %30, %32 : vector<8x128xf32>
    %cst_22 = arith.constant 0.000000e+00 : f32
    %34 = vector.broadcast %cst_22 : f32 to vector<8x128xf32>
    %35 = arith.maximumf %33, %34 : vector<8x128xf32>
    %36 = arith.truncf %35 : vector<8x128xf32> to vector<8x128xbf16>
    %c0_23 = arith.constant 0 : index
    %c0_24 = arith.constant 0 : index
    %37 = vector.load %arg10[%c0_23, %c0_24] : memref<128x128xbf16, #tpu.memory_space<vmem>>, vector<128x128xbf16>
    %cst_25 = arith.constant dense<0.000000e+00> : vector<8x128xf32>
    %38 = tpu.matmul %36, %37, %cst_25 {dimension_numbers = #tpu.dot_dimension_numbers<[1], [0], [0], [1], [0, 0, 1, 1], [], []>} : vector<8x128xbf16>, vector<128x128xbf16>, vector<8x128xf32> -> vector<8x128xf32>
    %c0_26 = arith.constant 0 : index
    %c0_27 = arith.constant 0 : index
    %39 = vector.load %arg11[%c0_26, %c0_27] : memref<1x128xf32, #tpu.memory_space<vmem>>, vector<1x128xf32>
    %40 = vector.broadcast %39 : vector<1x128xf32> to vector<8x128xf32>
    %41 = arith.addf %38, %40 : vector<8x128xf32>
    %cst_28 = arith.constant 0.000000e+00 : f32
    %42 = vector.broadcast %cst_28 : f32 to vector<8x128xf32>
    %43 = arith.maximumf %41, %42 : vector<8x128xf32>
    %44 = arith.truncf %43 : vector<8x128xf32> to vector<8x128xbf16>
    %c0_29 = arith.constant 0 : index
    %c0_30 = arith.constant 0 : index
    %45 = vector.load %arg12[%c0_29, %c0_30] : memref<128x1024xbf16, #tpu.memory_space<vmem>>, vector<128x1024xbf16>
    %cst_31 = arith.constant dense<0.000000e+00> : vector<8x1024xf32>
    %46 = tpu.matmul %44, %45, %cst_31 {dimension_numbers = #tpu.dot_dimension_numbers<[1], [0], [0], [1], [0, 0, 1, 1], [], []>} : vector<8x128xbf16>, vector<128x1024xbf16>, vector<8x1024xf32> -> vector<8x1024xf32>
    %c0_32 = arith.constant 0 : index
    %c0_33 = arith.constant 0 : index
    %47 = vector.load %arg13[%c0_32, %c0_33] : memref<1x1024xf32, #tpu.memory_space<vmem>>, vector<1x1024xf32>
    %48 = vector.broadcast %47 : vector<1x1024xf32> to vector<8x1024xf32>
    %49 = arith.addf %46, %48 : vector<8x1024xf32>
    %50 = arith.negf %49 : vector<8x1024xf32>
    %51 = math.exp %50 : vector<8x1024xf32>
    %cst_34 = arith.constant 1.000000e+00 : f32
    %52 = vector.broadcast %cst_34 : f32 to vector<8x1024xf32>
    %53 = arith.addf %52, %51 : vector<8x1024xf32>
    %54 = arith.divf %52, %53 : vector<8x1024xf32>
    %c0_35 = arith.constant 0 : index
    %c0_36 = arith.constant 0 : index
    %55 = vector.load %arg14[%c0_35, %c0_36] : memref<1x128xf32, #tpu.memory_space<vmem>>, vector<1x128xf32>
    %56 = vector.broadcast %55 : vector<1x128xf32> to vector<8x128xf32>
    %57 = arith.mulf %24, %56 : vector<8x128xf32>
    %c0_37 = arith.constant 0 : index
    %c0_38 = arith.constant 0 : index
    %58 = vector.load %arg15[%c0_37, %c0_38] : memref<1x128xf32, #tpu.memory_space<vmem>>, vector<1x128xf32>
    %59 = vector.broadcast %58 : vector<1x128xf32> to vector<8x128xf32>
    %60 = arith.addf %57, %59 : vector<8x128xf32>
    %c0_39 = arith.constant 0 : index
    %c0_40 = arith.constant 0 : index
    %61 = vector.load %arg16[%c0_39, %c0_40] : memref<8x1024xf32, #tpu.memory_space<vmem>>, vector<8x1024xf32>
    tpu.vector_store %arg16[%c0_39, %c0_40], %54 {strides = array<i32>} : memref<8x1024xf32, #tpu.memory_space<vmem>>, vector<8x1024xf32>,
    %62 = tpu.concatenate %22, %23, %24, %25, %26, %22, %24, %60 in 1 : vector<8x128xf32>, vector<8x128xf32>, vector<8x128xf32>, vector<8x128xf32>, vector<8x128xf32>, vector<8x128xf32>, vector<8x128xf32>, vector<8x128xf32> -> vector<8x1024xf32>
    %c0_41 = arith.constant 0 : index
    %c0_42 = arith.constant 0 : index
    %63 = vector.load %arg17[%c0_41, %c0_42] : memref<8x1024xf32, #tpu.memory_space<vmem>>, vector<8x1024xf32>
    tpu.vector_store %arg17[%c0_41, %c0_42], %62 {strides = array<i32>} : memref<8x1024xf32, #tpu.memory_space<vmem>>, vector<8x1024xf32>,
    return
  }
  func.func @transform_0(%arg0: i32) -> (i32, i32) {
    %c0_i32 = arith.constant 0 : i32
    %c0_i32_0 = arith.constant 0 : i32
    return %arg0, %c0_i32 : i32, i32
  }
  func.func @transform_1(%arg0: i32) -> (i32, i32) {
    %c0_i32 = arith.constant 0 : i32
    %c0_i32_0 = arith.constant 0 : i32
    %c0_i32_1 = arith.constant 0 : i32
    return %c0_i32, %c0_i32_0 : i32, i32
  }
  func.func @transform_2(%arg0: i32) -> (i32, i32) {
    %c0_i32 = arith.constant 0 : i32
    %c0_i32_0 = arith.constant 0 : i32
    %c0_i32_1 = arith.constant 0 : i32
    return %c0_i32, %c0_i32_0 : i32, i32
  }
  func.func @transform_3(%arg0: i32) -> (i32, i32) {
    %c0_i32 = arith.constant 0 : i32
    %c0_i32_0 = arith.constant 0 : i32
    %c0_i32_1 = arith.constant 0 : i32
    return %c0_i32, %c0_i32_0 : i32, i32
  }
  func.func @transform_4(%arg0: i32) -> (i32, i32) {
    %c0_i32 = arith.constant 0 : i32
    %c0_i32_0 = arith.constant 0 : i32
    %c0_i32_1 = arith.constant 0 : i32
    return %c0_i32, %c0_i32_0 : i32, i32
  }
  func.func @transform_5(%arg0: i32) -> (i32, i32) {
    %c0_i32 = arith.constant 0 : i32
    %c0_i32_0 = arith.constant 0 : i32
    %c0_i32_1 = arith.constant 0 : i32
    return %c0_i32, %c0_i32_0 : i32, i32
  }
  func.func @transform_6(%arg0: i32) -> (i32, i32) {
    %c0_i32 = arith.constant 0 : i32
    %c0_i32_0 = arith.constant 0 : i32
    %c0_i32_1 = arith.constant 0 : i32
    return %c0_i32, %c0_i32_0 : i32, i32
  }
  func.func @transform_7(%arg0: i32) -> (i32, i32) {
    %c0_i32 = arith.constant 0 : i32
    %c0_i32_0 = arith.constant 0 : i32
    %c0_i32_1 = arith.constant 0 : i32
    return %c0_i32, %c0_i32_0 : i32, i32
  }
  func.func @transform_8(%arg0: i32) -> (i32, i32) {
    %c0_i32 = arith.constant 0 : i32
    %c0_i32_0 = arith.constant 0 : i32
    %c0_i32_1 = arith.constant 0 : i32
    return %c0_i32, %c0_i32_0 : i32, i32
  }
  func.func @transform_9(%arg0: i32) -> (i32, i32) {
    %c0_i32 = arith.constant 0 : i32
    %c0_i32_0 = arith.constant 0 : i32
    %c0_i32_1 = arith.constant 0 : i32
    return %c0_i32, %c0_i32_0 : i32, i32
  }
  func.func @transform_10(%arg0: i32) -> (i32, i32) {
    %c0_i32 = arith.constant 0 : i32
    %c0_i32_0 = arith.constant 0 : i32
    %c0_i32_1 = arith.constant 0 : i32
    return %c0_i32, %c0_i32_0 : i32, i32
  }
  func.func @transform_11(%arg0: i32) -> (i32, i32) {
    %c0_i32 = arith.constant 0 : i32
    %c0_i32_0 = arith.constant 0 : i32
    %c0_i32_1 = arith.constant 0 : i32
    return %c0_i32, %c0_i32_0 : i32, i32
  }
  func.func @transform_12(%arg0: i32) -> (i32, i32) {
    %c0_i32 = arith.constant 0 : i32
    %c0_i32_0 = arith.constant 0 : i32
    %c0_i32_1 = arith.constant 0 : i32
    return %c0_i32, %c0_i32_0 : i32, i32
  }
  func.func @transform_13(%arg0: i32) -> (i32, i32) {
    %c0_i32 = arith.constant 0 : i32
    %c0_i32_0 = arith.constant 0 : i32
    %c0_i32_1 = arith.constant 0 : i32
    return %c0_i32, %c0_i32_0 : i32, i32
  }
  func.func @transform_14(%arg0: i32) -> (i32, i32) {
    %c0_i32 = arith.constant 0 : i32
    %c0_i32_0 = arith.constant 0 : i32
    %c0_i32_1 = arith.constant 0 : i32
    return %c0_i32, %c0_i32_0 : i32, i32
  }
  func.func @transform_15(%arg0: i32) -> (i32, i32) {
    %c0_i32 = arith.constant 0 : i32
    %c0_i32_0 = arith.constant 0 : i32
    return %arg0, %c0_i32 : i32, i32
  }
  func.func @transform_16(%arg0: i32) -> (i32, i32) {
    %c0_i32 = arith.constant 0 : i32
    %c0_i32_0 = arith.constant 0 : i32
    return %arg0, %c0_i32 : i32, i32
  }
}

</mosaic_0001>

<bundles_post_ra>
// kernel: tpu_custom_call.1
= control target key start
LH: loop header
LB: loop body
LE: loop exit
PB: predicated region body
PF: predicated region fallthrough
CT: control target
= control target key end

     0   :  { %s4347_s0 = inlined_call_operand.hbm [shape: bf16[8,1024], index: 0, kind: input, shape index: {}]   ;;  %s4348_s1 = inlined_call_operand.hbm [shape: bf16[1024,256], index: 1, kind: input, shape index: {}]   ;;  %s4349_s2 = inlined_call_operand.vmem [shape: f32[1,256], index: 2, kind: input, shape index: {}]   ;;  %s4350_s3 = inlined_call_operand.hbm [shape: bf16[256,256], index: 3, kind: input, shape index: {}]   ;;  %s4351_s4 = inlined_call_operand.hbm [shape: f32[1,256], index: 4, kind: input, shape index: {}]   ;;  %s4352_s5 = inlined_call_operand.hbm [shape: bf16[256,640], index: 5, kind: input, shape index: {}]   ;;  %s4353_s6 = inlined_call_operand.vmem [shape: f32[1,640], index: 6, kind: input, shape index: {}]   ;;  %s4354_s7 = inlined_call_operand.hbm [shape: bf16[256,128], index: 7, kind: input, shape index: {}]   ;;  %s4355_s8 = inlined_call_operand.vmem [shape: f32[1,128], index: 8, kind: input, shape index: {}]   ;;  %s4356_s9 = inlined_call_operand.hbm [shape: bf16[128,128], index: 9, kind: input, shape index: {}]   ;;  %s4357_s10 = inlined_call_operand.vmem [shape: f32[1,128], index: 10, kind: input, shape index: {}]   ;;  %s4358_s11 = inlined_call_operand.hbm [shape: bf16[128,1024], index: 11, kind: input, shape index: {}]   ;;  %s4359_s12 = inlined_call_operand.vmem [shape: f32[1,1024], index: 12, kind: input, shape index: {}]   ;;  %s4360_s13 = inlined_call_operand.vmem [shape: f32[1,128], index: 13, kind: input, shape index: {}]   ;;  %s4361_s14 = inlined_call_operand.vmem [shape: f32[1,128], index: 14, kind: input, shape index: {}]   ;;  %s4362_s15 = inlined_call_operand.hbm [shape: f32[8,1024], index: 15, kind: output, shape index: {0}]   ;;  %s4363_s16 = inlined_call_operand.hbm [shape: f32[8,1024], index: 16, kind: output, shape index: {1}]  }
   0x1   :  { %4364 = sst [smem:[#allocation26_spill]] %s4347_s0 }
   0x2   :  { %22 = vsyncpa [#allocation3], 0 }
   0x3   :  { %23 = vsyncpa [#allocation6], 0 }
   0x4   :  { %24 = vsyncpa [#allocation9], 0 }
   0x5   :  { %25 = vsyncpa [#allocation12], 0 }
   0x6   :  { %26 = vsyncpa [#allocation15], 0 }
   0x7   :  { %27 = vsyncpa [#allocation4], 0 }
   0x8   :  { %28 = vsyncpa [#allocation18], 0  ;;  %s4117_s21 = smov [#allocation5]  }
   0x9   :  { %s44_s22 = sshll.u32 %s4117_s21, 4  ;;  %s45_s22 = int_to_ptr.vmem [resolvable:$true] %s44_s22 }
   0xa   :  { %s3911_s23 = scalar_lea.vmem %s45_s22, 16384  ;;  %p3916_p1 = scmp.lt.s32.totalorder %s45_s22, %s45_s22 }
   0xb   :  { %p3912_p0 = scmp.ne.s32.totalorder %s45_s22, %s3911_s23  ;;  %p3917_p2 = scmp.lt.s32.totalorder %s3911_s23, %s3911_s23 }
   0xd   :  { %p3918_p3 = por %p3917_p2, %p3916_p1 }
   0xf   :  { %p3919_p4 = pnand %p3918_p3, %p3912_p0 }
  0x11   :  { %3922 = shalt.err (!%p3919_p4)
}
  0x12   :  { %s4118_s24 = smov 128   ;;  %s4119_s25 = smov 8  }
  0x13   :  { %50 = dma.hbm_to_vmem [thread:$0]  %s4348_s1, 16384, %s45_s22, [#allocation6], %s4118_s24, %s4118_s24, %s4119_s25  }
  0x14   :  { %s4120_s28 = smov [#allocation8]   ;;  %s4121_s30 = smov [#allocation11]  }
  0x15   :  { %s71_s29 = sshll.u32 %s4120_s28, 4  ;;  %s94_s0 = sshll.u32 %s4121_s30, 4  ;;  %s72_s29 = int_to_ptr.vmem [resolvable:$true] %s71_s29  ;;  %s95_s0 = int_to_ptr.vmem [resolvable:$true] %s94_s0 }
  0x16   :  { %s3931_s17 = scalar_lea.vmem %s72_s29, 32  ;;  %p3936_p6 = scmp.lt.s32.totalorder %s72_s29, %s72_s29 }
  0x17   :  { %p3932_p5 = scmp.ne.s32.totalorder %s72_s29, %s3931_s17  ;;  %p3937_p7 = scmp.lt.s32.totalorder %s3931_s17, %s3931_s17 }
  0x19   :  { %p3938_p8 = por %p3937_p7, %p3936_p6 }
  0x1b   :  { %p3939_p9 = pnand %p3938_p8, %p3932_p5 }
  0x1d   :  { %3942 = shalt.err (!%p3939_p9)
}
  0x1e   :  { %74 = dma.hbm_to_vmem [thread:$0]  %s4351_s4, 32, %s72_s29, [#allocation9]  }
  0x1f   :  { %s3951_s20 = scalar_lea.vmem %s95_s0, 2048  ;;  %p3956_p11 = scmp.lt.s32.totalorder %s95_s0, %s95_s0 }
  0x20   :  { %p3952_p10 = scmp.ne.s32.totalorder %s95_s0, %s3951_s20  ;;  %p3957_p12 = scmp.lt.s32.totalorder %s3951_s20, %s3951_s20 }
  0x22   :  { %p3958_p13 = por %p3957_p12, %p3956_p11 }
  0x24   :  { %p3959_p0 = pnand %p3958_p13, %p3952_p10 }
  0x26   :  { %3962 = shalt.err (!%p3959_p0)
}
  0x27   :  { %s4122_s1 = smov 64   ;;  %s4123_s21 = smov 4  }
  0x28   :  { %100 = dma.hbm_to_vmem [thread:$0]  %s4354_s7, 2048, %s95_s0, [#allocation12], %s4122_s1, %s4122_s1, %s4123_s21  }
  0x29   :  { %s4124_s26 = smov [#allocation2]   ;;  %s4125_s4 = smov [#allocation7]  }
  0x2a   :  { %s35_s27 = sshll.u32 %s4124_s26, 4  ;;  %s58_s28 = sshll.u32 %s4125_s4, 4  ;;  %s36_s27 = int_to_ptr.vmem [resolvable:$true] %s35_s27  ;;  %s59_s28 = int_to_ptr.vmem [resolvable:$true] %s58_s28 }
  0x2b   :  { %s3971_s29 = scalar_lea.vmem %s36_s27, 512  ;;  %p3976_p2 = scmp.lt.s32.totalorder %s36_s27, %s36_s27 }
  0x2c   :  { %p3972_p1 = scmp.ne.s32.totalorder %s36_s27, %s3971_s29  ;;  %p3977_p3 = scmp.lt.s32.totalorder %s3971_s29, %s3971_s29 }
  0x2e   :  { %p3978_p4 = por %p3977_p3, %p3976_p2 }
  0x30   :  { %p3979_p5 = pnand %p3978_p4, %p3972_p1 }
  0x32   :  { %3982 = shalt.err (!%p3979_p5)
}
  0x33   :  { %s4365_s18 = sld [smem:[#allocation26_spill]]  ;;  %s3991_s19 = scalar_lea.vmem %s59_s28, 4096 }
  0x34   :  { %p3992_p6 = scmp.ne.s32.totalorder %s59_s28, %s3991_s19  ;;  %p3996_p7 = scmp.lt.s32.totalorder %s59_s28, %s59_s28 }
  0x35   :  { %p3997_p8 = scmp.lt.s32.totalorder %s3991_s19, %s3991_s19 }
  0x37   :  { %p3998_p9 = por %p3997_p8, %p3996_p7 }
  0x39   :  { %38 = dma.hbm_to_vmem [thread:$0]  %s4365_s18, 512, %s36_s27, [#allocation3]  }
  0x3a   :  { %p3999_p10 = pnand %p3998_p9, %p3992_p6 }
  0x3c   :  { %4002 = shalt.err (!%p3999_p10)
}
  0x3d   :  { %64 = dma.hbm_to_vmem [thread:$0]  %s4350_s3, 4096, %s59_s28, [#allocation6], %s4118_s24, %s4118_s24, %s4119_s25  }
  0x3e   :  { %s4126_s20 = smov [#allocation10]  }
  0x3f   :  { %s80_s22 = sshll.u32 %s4126_s20, 4  ;;  %s81_s22 = int_to_ptr.vmem [resolvable:$true] %s80_s22 }
  0x40   :  { %s4011_s23 = scalar_lea.vmem %s81_s22, 10240  ;;  %p4016_p12 = scmp.lt.s32.totalorder %s81_s22, %s81_s22 }
  0x41   :  { %p4012_p11 = scmp.ne.s32.totalorder %s81_s22, %s4011_s23  ;;  %p4017_p13 = scmp.lt.s32.totalorder %s4011_s23, %s4011_s23 }
  0x43   :  { %p4018_p0 = por %p4017_p13, %p4016_p12 }
  0x45   :  { %p4019_p1 = pnand %p4018_p0, %p4012_p11 }
  0x47   :  { %4022 = shalt.err (!%p4019_p1)
}
  0x48   :  { %s4127_s26 = smov 320   ;;  %s4128_s27 = smov 20  }
  0x49   :  { %86 = dma.hbm_to_vmem [thread:$0]  %s4352_s5, 10240, %s81_s22, [#allocation9], %s4127_s26, %s4127_s26, %s4128_s27  }
  0x4a   :  { %s4129_s30 = smov [#allocation13]   ;;  %s4130_s18 = smov [#allocation14]  }
  0x4b   :  { %s108_s17 = sshll.u32 %s4129_s30, 4  ;;  %s122_s3 = sshll.u32 %s4130_s18, 4  ;;  %s109_s17 = int_to_ptr.vmem [resolvable:$true] %s108_s17  ;;  %s123_s3 = int_to_ptr.vmem [resolvable:$true] %s122_s3 }
  0x4c   :  { %s4031_s24 = scalar_lea.vmem %s109_s17, 1024  ;;  %p4036_p3 = scmp.lt.s32.totalorder %s109_s17, %s109_s17 }
  0x4d   :  { %p4032_p2 = scmp.ne.s32.totalorder %s109_s17, %s4031_s24  ;;  %p4037_p4 = scmp.lt.s32.totalorder %s4031_s24, %s4031_s24 }
  0x4f   :  { %p4038_p5 = por %p4037_p4, %p4036_p3 }
  0x51   :  { %p4039_p6 = pnand %p4038_p5, %p4032_p2 }
  0x53   :  { %4042 = shalt.err (!%p4039_p6)
}
  0x54   :  { %114 = dma.hbm_to_vmem [thread:$0]  %s4356_s9, 1024, %s109_s17, [#allocation12], %s4122_s1, %s4122_s1, %s4123_s21  }
  0x55   :  { %s4051_s5 = scalar_lea.vmem %s123_s3, 8192  ;;  %p4056_p8 = scmp.lt.s32.totalorder %s123_s3, %s123_s3 }
  0x56   :  { %p4052_p7 = scmp.ne.s32.totalorder %s123_s3, %s4051_s5  ;;  %p4057_p9 = scmp.lt.s32.totalorder %s4051_s5, %s4051_s5 }
  0x58   :  { %p4058_p10 = por %p4057_p9, %p4056_p8 }
  0x5a   :  { %p4059_p11 = pnand %p4058_p10, %p4052_p7 }
  0x5c   :  { %4062 = shalt.err (!%p4059_p11)
}
  0x5d   :  { %s4131_s19 = smov 512   ;;  %s4132_s7 = smov 32  }
  0x5e   :  { %128 = dma.hbm_to_vmem [thread:$0]  %s4358_s11, 8192, %s123_s3, [#allocation15], %s4131_s19, %s4131_s19, %s4132_s7  }
  0x5f   :  { %4103 = dma.done.wait [#allocation3], 512  }
  0x60   :  { %4104 = vsyncadd [#allocation3], 4294966784 }
  0x61   :  { %4105 = dma.done.wait [#allocation6], 20480  }
  0x62   :  { %4106 = vsyncadd [#allocation6], 4294946816 }
  0x63   :  { %4107 = dma.done.wait [#allocation9], 10272  }
  0x64   :  { %4108 = vsyncadd [#allocation9], 4294957024 }
  0x65   :  { %4109 = dma.done.wait [#allocation12], 3072  }
  0x66   :  { %4110 = vsyncadd [#allocation12], 4294964224 }
  0x67   :  { %4111 = dma.done.wait [#allocation15], 8192  }
  0x68   :  { %4112 = vsyncadd [#allocation15], 4294959104  ;;  %v3487_v0 = vld [vmem:[#allocation5 + $0x74] ss:$8 sps:$4 sm:$0xff]   ;;  %v3491_v2 = vld [vmem:[#allocation5 + $0x70] ss:$8 sps:$4 sm:$0xff]  }
  0x69   :  { %v3489_v1 = vld [vmem:[#allocation5 + $0x174] ss:$8 sps:$4 sm:$0xff]   ;;  %972 = vmatprep.subr.bf16.mxu0 %v3487_v0  ;;  %v3492_v3 = vld [vmem:[#allocation5 + $0x170] ss:$8 sps:$4 sm:$0xff]   ;;  %v3493_v4 = vld [vmem:[#allocation5 + $0x64] ss:$8 sps:$4 sm:$0xff]  }
  0x6a   :  { %1013 = vmatprep.subr.bf16.mxu1 %v3489_v1  ;;  %973 = vmatpush1.bf16.msra.mxu0 %v3491_v2  ;;  %v3495_v5 = vld [vmem:[#allocation5 + $0x164] ss:$8 sps:$4 sm:$0xff]   ;;  %v3497_v6 = vld [vmem:[#allocation5 + $0x60] ss:$8 sps:$4 sm:$0xff]   ;;  %v3499_v8 = vld [vmem:[#allocation5 + $0x54] ss:$8 sps:$4 sm:$0xff]  }
  0x6b   :  { %1014 = vmatpush1.bf16.msra.mxu1 %v3492_v3  ;;  %974 = vmatprep.subr.bf16.mxu0 %v3493_v4  ;;  %v3498_v7 = vld [vmem:[#allocation5 + $0x160] ss:$8 sps:$4 sm:$0xff]   ;;  %v3501_v9 = vld [vmem:[#allocation5 + $0x154] ss:$8 sps:$4 sm:$0xff]   ;;  %v3503_v10 = vld [vmem:[#allocation5 + $0x50] ss:$8 sps:$4 sm:$0xff]  }
  0x6c   :  { %1015 = vmatprep.subr.bf16.mxu1 %v3495_v5  ;;  %v3504_v11 = vld [vmem:[#allocation5 + $0x150] ss:$8 sps:$4 sm:$0xff]   ;;  %v3505_v12 = vld [vmem:[#allocation5 + $0x44] ss:$8 sps:$4 sm:$0xff]   ;;  %v3509_v14 = vld [vmem:[#allocation5 + $0x40] ss:$8 sps:$4 sm:$0xff]  }
  0x6d   :  { %v3507_v13 = vld [vmem:[#allocation5 + $0x144] ss:$8 sps:$4 sm:$0xff]   ;;  %v3510_v15 = vld [vmem:[#allocation5 + $0x140] ss:$8 sps:$4 sm:$0xff]   ;;  %v3511_v16 = vld [vmem:[#allocation5 + $0x34] ss:$8 sps:$4 sm:$0xff]  }
  0x6e   :  { %975 = vmatpush1.bf16.msra.mxu0 %v3497_v6  ;;  %v3513_v17 = vld [vmem:[#allocation5 + $0x134] ss:$8 sps:$4 sm:$0xff]   ;;  %v3515_v18 = vld [vmem:[#allocation5 + $0x30] ss:$8 sps:$4 sm:$0xff]   ;;  %v3517_v20 = vld [vmem:[#allocation5 + $0x24] ss:$8 sps:$4 sm:$0xff]  }
  0x6f   :  { %1016 = vmatpush1.bf16.msra.mxu1 %v3498_v7  ;;  %976 = vmatprep.subr.bf16.mxu0 %v3499_v8  ;;  %v3516_v19 = vld [vmem:[#allocation5 + $0x130] ss:$8 sps:$4 sm:$0xff]   ;;  %v3519_v21 = vld [vmem:[#allocation5 + $0x124] ss:$8 sps:$4 sm:$0xff]   ;;  %v3521_v22 = vld [vmem:[#allocation5 + $0x20] ss:$8 sps:$4 sm:$0xff]  }
  0x70   :  { %1017 = vmatprep.subr.bf16.mxu1 %v3501_v9  ;;  %v3522_v23 = vld [vmem:[#allocation5 + $0x120] ss:$8 sps:$4 sm:$0xff]   ;;  %v3523_v24 = vld [vmem:[#allocation5 + $0x14] ss:$8 sps:$4 sm:$0xff]   ;;  %v3527_v26 = vld [vmem:[#allocation5 + $0x10] ss:$8 sps:$4 sm:$0xff]  }
  0x71   :  { %v3525_v25 = vld [vmem:[#allocation5 + $0x114] ss:$8 sps:$4 sm:$0xff]   ;;  %v3528_v27 = vld [vmem:[#allocation5 + $0x110] ss:$8 sps:$4 sm:$0xff]   ;;  %v3529_v28 = vld [vmem:[#allocation5 + $0x4] ss:$8 sps:$4 sm:$0xff]  }
  0x72   :  { %977 = vmatpush1.bf16.msra.mxu0 %v3503_v10  ;;  %v3531_v29 = vld [vmem:[#allocation5 + $0x104] ss:$8 sps:$4 sm:$0xff]   ;;  %v3533_v30 = vld [vmem:[#allocation5] ss:$8 sps:$4 sm:$0xff]   ;;  %v3535_v32 = vld [vmem:[#allocation5 + $0xf4] ss:$8 sps:$4 sm:$0xff]  }
  0x73   :  { %1018 = vmatpush1.bf16.msra.mxu1 %v3504_v11  ;;  %978 = vmatprep.subr.bf16.mxu0 %v3505_v12  ;;  %v3534_v31 = vld [vmem:[#allocation5 + $0x100] ss:$8 sps:$4 sm:$0xff]   ;;  %v3537_v33 = vld [vmem:[#allocation5 + $0x1f4] ss:$8 sps:$4 sm:$0xff]   ;;  %v3539_v34 = vld [vmem:[#allocation5 + $0xf0] ss:$8 sps:$4 sm:$0xff]  }
  0x74   :  { %1019 = vmatprep.subr.bf16.mxu1 %v3507_v13  ;;  %v3540_v35 = vld [vmem:[#allocation5 + $0x1f0] ss:$8 sps:$4 sm:$0xff]   ;;  %v3541_v36 = vld [vmem:[#allocation5 + $0xe4] ss:$8 sps:$4 sm:$0xff]   ;;  %v3545_v38 = vld [vmem:[#allocation5 + $0xe0] ss:$8 sps:$4 sm:$0xff]  }
  0x75   :  { %v3543_v37 = vld [vmem:[#allocation5 + $0x1e4] ss:$8 sps:$4 sm:$0xff]   ;;  %v3546_v39 = vld [vmem:[#allocation5 + $0x1e0] ss:$8 sps:$4 sm:$0xff]   ;;  %v3547_v40 = vld [vmem:[#allocation5 + $0xd4] ss:$8 sps:$4 sm:$0xff]  }
  0x76   :  { %979 = vmatpush1.bf16.msra.mxu0 %v3509_v14  ;;  %v3549_v41 = vld [vmem:[#allocation5 + $0x1d4] ss:$8 sps:$4 sm:$0xff]   ;;  %v3551_v42 = vld [vmem:[#allocation5 + $0xd0] ss:$8 sps:$4 sm:$0xff]   ;;  %v3553_v44 = vld [vmem:[#allocation5 + $0xc4] ss:$8 sps:$4 sm:$0xff]  }
  0x77   :  { %1020 = vmatpush1.bf16.msra.mxu1 %v3510_v15  ;;  %980 = vmatprep.subr.bf16.mxu0 %v3511_v16  ;;  %v3552_v43 = vld [vmem:[#allocation5 + $0x1d0] ss:$8 sps:$4 sm:$0xff]   ;;  %v3555_v45 = vld [vmem:[#allocation5 + $0x1c4] ss:$8 sps:$4 sm:$0xff]   ;;  %v3557_v49 = vld [vmem:[#allocation5 + $0xc0] ss:$8 sps:$4 sm:$0xff]  }
  0x78   :  { %1021 = vmatprep.subr.bf16.mxu1 %v3513_v17  ;;  %v160_v46 = vld [vmem:[#allocation2] sm:$0xff]  ;;  %v161_v48 = vld [vmem:[#allocation2 + $0x8] sm:$0xff]  ;;  %v3559_v52 = vld [vmem:[#allocation5 + $0xb4] ss:$8 sps:$4 sm:$0xff]   ;;  %vm4134_vm0 = vmmov 0  }
  0x79   :  { %v3046_v47 = vcombine.high %v160_v46, %v160_v46  ;;  %v3558_v50 = vld [vmem:[#allocation5 + $0x1c0] ss:$8 sps:$4 sm:$0xff]   ;;  %v3048_v51 = vcombine.high %v161_v48, %v161_v48  ;;  %v3561_v53 = vld [vmem:[#allocation5 + $0x1b4] ss:$8 sps:$4 sm:$0xff]   ;;  %v3563_v54 = vld [vmem:[#allocation5 + $0xb0] ss:$8 sps:$4 sm:$0xff]   ;;  %v3045_v6 = vcombine.low %v160_v46, %v160_v46  ;;  %v3047_v7 = vcombine.low %v161_v48, %v161_v48 }
  0x7a   :  { %981 = vmatpush1.bf16.msra.mxu0 %v3515_v18  ;;  %v3564_v55 = vld [vmem:[#allocation5 + $0x1b0] ss:$8 sps:$4 sm:$0xff]   ;;  %v3565_v56 = vld [vmem:[#allocation5 + $0xa4] ss:$8 sps:$4 sm:$0xff]   ;;  %v3569_v58 = vld [vmem:[#allocation5 + $0xa0] ss:$8 sps:$4 sm:$0xff]  }
  0x7b   :  { %1022 = vmatpush1.bf16.msra.mxu1 %v3516_v19  ;;  %982 = vmatprep.subr.bf16.mxu0 %v3517_v20  ;;  %v3567_v57 = vld [vmem:[#allocation5 + $0x1a4] ss:$8 sps:$4 sm:$0xff]   ;;  %v3570_v59 = vld [vmem:[#allocation5 + $0x1a0] ss:$8 sps:$4 sm:$0xff]   ;;  %v3571_v60 = vld [vmem:[#allocation5 + $0x94] ss:$8 sps:$4 sm:$0xff]  }
  0x7c   :  { %1023 = vmatprep.subr.bf16.mxu1 %v3519_v21  ;;  %1004 = vmatprep.mubr.bf16.mxu0 %v3046_v47  ;;  %v3573_v61 = vld [vmem:[#allocation5 + $0x194] ss:$8 sps:$4 sm:$0xff]   ;;  %v3575_v62 = vld [vmem:[#allocation5 + $0x90] ss:$8 sps:$4 sm:$0xff]   ;;  %v3577_v0 = vld [vmem:[#allocation5 + $0x84] ss:$8 sps:$4 sm:$0xff]  }
  0x7d   :  { %1045 = vmatprep.mubr.bf16.mxu1 %v3048_v51  ;;  %v3576_v63 = vld [vmem:[#allocation5 + $0x190] ss:$8 sps:$4 sm:$0xff]   ;;  %v3579_v1 = vld [vmem:[#allocation5 + $0x184] ss:$8 sps:$4 sm:$0xff]   ;;  %v3581_v2 = vld [vmem:[#allocation5 + $0x80] ss:$8 sps:$4 sm:$0xff]  }
  0x7e   :  { %983 = vmatpush1.bf16.msra.mxu0 %v3521_v22  ;;  %v3582_v3 = vld [vmem:[#allocation5 + $0x180] ss:$8 sps:$4 sm:$0xff]   ;;  %v3589_v4 = vld [vmem:[#allocation5 + $0x274] ss:$8 sps:$4 sm:$0xff]   ;;  %v3587_v8 = vld [vmem:[#allocation5 + $0x270] ss:$8 sps:$4 sm:$0xff]  }
  0x7f   :  { %1024 = vmatpush1.bf16.msra.mxu1 %v3522_v23  ;;  %984 = vmatprep.subr.bf16.mxu0 %v3523_v24  ;;  %v3592_v5 = vld [vmem:[#allocation5 + $0x374] ss:$8 sps:$4 sm:$0xff]   ;;  %v3590_v9 = vld [vmem:[#allocation5 + $0x370] ss:$8 sps:$4 sm:$0xff]   ;;  %v3595_v10 = vld [vmem:[#allocation5 + $0x264] ss:$8 sps:$4 sm:$0xff]  }
  0x80   :  { %1025 = vmatprep.subr.bf16.mxu1 %v3525_v25  ;;  %v3598_v11 = vld [vmem:[#allocation5 + $0x364] ss:$8 sps:$4 sm:$0xff]   ;;  %v3593_v12 = vld [vmem:[#allocation5 + $0x260] ss:$8 sps:$4 sm:$0xff]   ;;  %v3601_v14 = vld [vmem:[#allocation5 + $0x254] ss:$8 sps:$4 sm:$0xff]  }
  0x81   :  { %v3596_v13 = vld [vmem:[#allocation5 + $0x360] ss:$8 sps:$4 sm:$0xff]   ;;  %v3604_v15 = vld [vmem:[#allocation5 + $0x354] ss:$8 sps:$4 sm:$0xff]   ;;  %v3599_v16 = vld [vmem:[#allocation5 + $0x250] ss:$8 sps:$4 sm:$0xff]  }
  0x82   :  { %985 = vmatpush1.bf16.msra.mxu0 %v3527_v26  ;;  %v3602_v17 = vld [vmem:[#allocation5 + $0x350] ss:$8 sps:$4 sm:$0xff]   ;;  %v3607_v18 = vld [vmem:[#allocation5 + $0x244] ss:$8 sps:$4 sm:$0xff]   ;;  %v3605_v20 = vld [vmem:[#allocation5 + $0x240] ss:$8 sps:$4 sm:$0xff]  }
  0x83   :  { %1026 = vmatpush1.bf16.msra.mxu1 %v3528_v27  ;;  %986 = vmatprep.subr.bf16.mxu0 %v3529_v28  ;;  %v3610_v19 = vld [vmem:[#allocation5 + $0x344] ss:$8 sps:$4 sm:$0xff]   ;;  %v3608_v21 = vld [vmem:[#allocation5 + $0x340] ss:$8 sps:$4 sm:$0xff]   ;;  %v3613_v22 = vld [vmem:[#allocation5 + $0x234] ss:$8 sps:$4 sm:$0xff]  }
  0x84   :  { %1027 = vmatprep.subr.bf16.mxu1 %v3531_v29  ;;  %v3616_v23 = vld [vmem:[#allocation5 + $0x334] ss:$8 sps:$4 sm:$0xff]   ;;  %v3611_v24 = vld [vmem:[#allocation5 + $0x230] ss:$8 sps:$4 sm:$0xff]   ;;  %v3619_v26 = vld [vmem:[#allocation5 + $0x224] ss:$8 sps:$4 sm:$0xff]  }
  0x85   :  { %v3614_v25 = vld [vmem:[#allocation5 + $0x330] ss:$8 sps:$4 sm:$0xff]   ;;  %v3622_v27 = vld [vmem:[#allocation5 + $0x324] ss:$8 sps:$4 sm:$0xff]   ;;  %v3617_v28 = vld [vmem:[#allocation5 + $0x220] ss:$8 sps:$4 sm:$0xff]  }
  0x86   :  { %987 = vmatpush1.bf16.msra.mxu0 %v3533_v30  ;;  %v3620_v29 = vld [vmem:[#allocation5 + $0x320] ss:$8 sps:$4 sm:$0xff]   ;;  %v3625_v30 = vld [vmem:[#allocation5 + $0x214] ss:$8 sps:$4 sm:$0xff]   ;;  %v3643_v46 = vld [vmem:[#allocation5 + $0x2e4] ss:$8 sps:$4 sm:$0xff]  }
  0x87   :  { %1028 = vmatpush1.bf16.msra.mxu1 %v3534_v31  ;;  %988 = vmatprep.subr.bf16.mxu0 %v3535_v32  ;;  %v3628_v31 = vld [vmem:[#allocation5 + $0x314] ss:$8 sps:$4 sm:$0xff]   ;;  %v3623_v32 = vld [vmem:[#allocation5 + $0x210] ss:$8 sps:$4 sm:$0xff]   ;;  %v3646_v47 = vld [vmem:[#allocation5 + $0x3e4] ss:$8 sps:$4 sm:$0xff]  }
  0x88   :  { %1029 = vmatprep.subr.bf16.mxu1 %v3537_v33  ;;  %v3626_v33 = vld [vmem:[#allocation5 + $0x310] ss:$8 sps:$4 sm:$0xff]   ;;  %v3641_v48 = vld [vmem:[#allocation5 + $0x2e0] ss:$8 sps:$4 sm:$0xff]   ;;  %v3652_v51 = vld [vmem:[#allocation5 + $0x3d4] ss:$8 sps:$4 sm:$0xff]  }
  0x8a   :  { %989 = vmatpush2.bf16.msra.mxu0 %v3539_v34  ;;  %v4259_v34 = vld [vmem:[#allocation2 + $0x10] sm:$0xff] }
  0x8b   :  { %1030 = vmatpush2.bf16.msra.mxu1 %v3540_v35  ;;  %990 = vmatprep.subr.bf16.mxu0 %v3541_v36  ;;  %v4261_v35 = vld [vmem:[#allocation2 + $0x18] sm:$0xff]  ;;  %v3631_v36 = vld [vmem:[#allocation5 + $0x204] ss:$8 sps:$4 sm:$0xff]  }
  0x8c   :  { %1031 = vmatprep.subr.bf16.mxu1 %v3543_v37  ;;  %v3634_v37 = vld [vmem:[#allocation5 + $0x304] ss:$8 sps:$4 sm:$0xff]  }
  0x8e   :  { %991 = vmatpush2.bf16.msra.mxu0 %v3545_v38  ;;  %v3050_v38 = vcombine.high %v4259_v34, %v4259_v34 }
  0x8f   :  { %1032 = vmatpush2.bf16.msra.mxu1 %v3546_v39  ;;  %992 = vmatprep.subr.bf16.mxu0 %v3547_v40  ;;  %v3052_v39 = vcombine.high %v4261_v35, %v4261_v35  ;;  %v3629_v40 = vld [vmem:[#allocation5 + $0x200] ss:$8 sps:$4 sm:$0xff]  }
  0x90   :  { %1033 = vmatprep.subr.bf16.mxu1 %v3549_v41  ;;  %v3632_v41 = vld [vmem:[#allocation5 + $0x300] ss:$8 sps:$4 sm:$0xff]  }
  0x92   :  { %993 = vmatpush2.bf16.msra.mxu0 %v3551_v42  ;;  %v3637_v42 = vld [vmem:[#allocation5 + $0x2f4] ss:$8 sps:$4 sm:$0xff]  }
  0x93   :  { %1034 = vmatpush2.bf16.msra.mxu1 %v3552_v43  ;;  %994 = vmatprep.subr.bf16.mxu0 %v3553_v44  ;;  %v3640_v43 = vld [vmem:[#allocation5 + $0x3f4] ss:$8 sps:$4 sm:$0xff]   ;;  %v3635_v44 = vld [vmem:[#allocation5 + $0x2f0] ss:$8 sps:$4 sm:$0xff]  }
  0x94   :  { %1035 = vmatprep.subr.bf16.mxu1 %v3555_v45  ;;  %v3638_v45 = vld [vmem:[#allocation5 + $0x3f0] ss:$8 sps:$4 sm:$0xff]  }
  0x96   :  { %995 = vmatpush2.bf16.msra.mxu0 %v3557_v49  ;;  %v3644_v49 = vld [vmem:[#allocation5 + $0x3e0] ss:$8 sps:$4 sm:$0xff]  }
  0x97   :  { %1036 = vmatpush2.bf16.msra.mxu1 %v3558_v50  ;;  %996 = vmatprep.subr.bf16.mxu0 %v3559_v52  ;;  %v3649_v50 = vld [vmem:[#allocation5 + $0x2d4] ss:$8 sps:$4 sm:$0xff]   ;;  %v3647_v52 = vld [vmem:[#allocation5 + $0x2d0] ss:$8 sps:$4 sm:$0xff]  }
  0x98   :  { %1037 = vmatprep.subr.bf16.mxu1 %v3561_v53  ;;  %v3650_v53 = vld [vmem:[#allocation5 + $0x3d0] ss:$8 sps:$4 sm:$0xff]  }
  0x9a   :  { %997 = vmatpush2.bf16.msra.mxu0 %v3563_v54  ;;  %v3655_v54 = vld [vmem:[#allocation5 + $0x2c4] ss:$8 sps:$4 sm:$0xff]  }
  0x9b   :  { %1038 = vmatpush2.bf16.msra.mxu1 %v3564_v55  ;;  %998 = vmatprep.subr.bf16.mxu0 %v3565_v56  ;;  %v3658_v55 = vld [vmem:[#allocation5 + $0x3c4] ss:$8 sps:$4 sm:$0xff]   ;;  %v3653_v56 = vld [vmem:[#allocation5 + $0x2c0] ss:$8 sps:$4 sm:$0xff]  }
  0x9c   :  { %1039 = vmatprep.subr.bf16.mxu1 %v3567_v57  ;;  %v3656_v57 = vld [vmem:[#allocation5 + $0x3c0] ss:$8 sps:$4 sm:$0xff]  }
  0x9e   :  { %999 = vmatpush2.bf16.msra.mxu0 %v3569_v58  ;;  %v3661_v58 = vld [vmem:[#allocation5 + $0x2b4] ss:$8 sps:$4 sm:$0xff]  }
  0x9f   :  { %1040 = vmatpush2.bf16.msra.mxu1 %v3570_v59  ;;  %1000 = vmatprep.subr.bf16.mxu0 %v3571_v60  ;;  %v3664_v59 = vld [vmem:[#allocation5 + $0x3b4] ss:$8 sps:$4 sm:$0xff]   ;;  %v3659_v60 = vld [vmem:[#allocation5 + $0x2b0] ss:$8 sps:$4 sm:$0xff]  }
  0xa0   :  { %1041 = vmatprep.subr.bf16.mxu1 %v3573_v61  ;;  %v3662_v61 = vld [vmem:[#allocation5 + $0x3b0] ss:$8 sps:$4 sm:$0xff]  }
  0xa2   :  { %1001 = vmatpush2.bf16.msra.mxu0 %v3575_v62  ;;  %v3667_v62 = vld [vmem:[#allocation5 + $0x2a4] ss:$8 sps:$4 sm:$0xff]  }
  0xa3   :  { %1042 = vmatpush2.bf16.msra.mxu1 %v3576_v63  ;;  %1002 = vmatprep.subr.bf16.mxu0 %v3577_v0  ;;  %v3670_v63 = vld [vmem:[#allocation5 + $0x3a4] ss:$8 sps:$4 sm:$0xff]   ;;  %v3665_v0 = vld [vmem:[#allocation5 + $0x2a0] ss:$8 sps:$4 sm:$0xff]  }
  0xa4   :  { %1043 = vmatprep.subr.bf16.mxu1 %v3579_v1  ;;  %v3668_v1 = vld [vmem:[#allocation5 + $0x3a0] ss:$8 sps:$4 sm:$0xff]  }
  0xa6   :  { %1003 = vmatpush2.bf16.msra.mxu0 %v3581_v2  ;;  %v3673_v2 = vld [vmem:[#allocation5 + $0x294] ss:$8 sps:$4 sm:$0xff]  }
  0xa7   :  { %1044 = vmatpush2.bf16.msra.mxu1 %v3582_v3  ;;  %1054 = vmatprep.subr.bf16.mxu0 %v3589_v4  ;;  %v3676_v3 = vld [vmem:[#allocation5 + $0x394] ss:$8 sps:$4 sm:$0xff]   ;;  %v3671_v4 = vld [vmem:[#allocation5 + $0x290] ss:$8 sps:$4 sm:$0xff]  }
  0xa8   :  { %1095 = vmatprep.subr.bf16.mxu1 %v3592_v5  ;;  %v3674_v5 = vld [vmem:[#allocation5 + $0x390] ss:$8 sps:$4 sm:$0xff]  }
  0xa9   :  { %1005 = vmatmul.mubr.bf16.vlgmr.msra.gmra.mxu0 %v3045_v6  ;;  %v3679_v6 = vld [vmem:[#allocation5 + $0x284] ss:$8 sps:$4 sm:$0xff]  }
  0xaa   :  { %1046 = vmatmul.mubr.bf16.vlgmr.msra.gmra.mxu1 %v3047_v7  ;;  %1055 = vmatpush1.bf16.msra.mxu0 %v3587_v8  ;;  %v3682_v7 = vld [vmem:[#allocation5 + $0x384] ss:$8 sps:$4 sm:$0xff]   ;;  %v3677_v8 = vld [vmem:[#allocation5 + $0x280] ss:$8 sps:$4 sm:$0xff]  }
  0xab   :  { %1096 = vmatpush1.bf16.msra.mxu1 %v3590_v9  ;;  %1056 = vmatprep.subr.bf16.mxu0 %v3595_v10  ;;  %v3680_v9 = vld [vmem:[#allocation5 + $0x380] ss:$8 sps:$4 sm:$0xff]   ;;  %v3049_v10 = vcombine.low %v4259_v34, %v4259_v34  ;;  %v3722_v34 = vld [vmem:[#allocation7 + $0xc4] ss:$8 sps:$4 sm:$0xff]  }
  0xac   :  { %1097 = vmatprep.subr.bf16.mxu1 %v3598_v11  ;;  %1086 = vmatprep.mubr.bf16.mxu0 %v3050_v38  ;;  %v3051_v11 = vcombine.low %v4261_v35, %v4261_v35  ;;  %v3720_v35 = vld [vmem:[#allocation7 + $0xc0] ss:$8 sps:$4 sm:$0xff]   ;;  %v3728_v38 = vld [vmem:[#allocation7 + $0xa4] ss:$8 sps:$4 sm:$0xff]  }
  0xad   :  { %1127 = vmatprep.mubr.bf16.mxu1 %v3052_v39  ;;  %v3726_v39 = vld [vmem:[#allocation7 + $0xa0] ss:$8 sps:$4 sm:$0xff]  }
  0xae   :  { %1057 = vmatpush1.bf16.msra.mxu0 %v3593_v12  ;;  %v3687_v12 = vld [vmem:[#allocation7 + $0x70] ss:$8 sps:$4 sm:$0xff]  }
  0xaf   :  { %1098 = vmatpush1.bf16.msra.mxu1 %v3596_v13  ;;  %1058 = vmatprep.subr.bf16.mxu0 %v3601_v14  ;;  %v3689_v13 = vld [vmem:[#allocation7 + $0x74] ss:$8 sps:$4 sm:$0xff]   ;;  %v3692_v14 = vld [vmem:[#allocation7 + $0x64] ss:$8 sps:$4 sm:$0xff]  }
  0xb0   :  { %1099 = vmatprep.subr.bf16.mxu1 %v3604_v15  ;;  %v3690_v15 = vld [vmem:[#allocation7 + $0x60] ss:$8 sps:$4 sm:$0xff]  }
  0xb2   :  { %1059 = vmatpush1.bf16.msra.mxu0 %v3599_v16  ;;  %v3695_v16 = vld [vmem:[#allocation7 + $0x54] ss:$8 sps:$4 sm:$0xff]  }
  0xb3   :  { %1100 = vmatpush1.bf16.msra.mxu1 %v3602_v17  ;;  %1060 = vmatprep.subr.bf16.mxu0 %v3607_v18  ;;  %v3693_v17 = vld [vmem:[#allocation7 + $0x50] ss:$8 sps:$4 sm:$0xff]   ;;  %v3698_v18 = vld [vmem:[#allocation7 + $0x44] ss:$8 sps:$4 sm:$0xff]  }
  0xb4   :  { %1101 = vmatprep.subr.bf16.mxu1 %v3610_v19  ;;  %v3696_v19 = vld [vmem:[#allocation7 + $0x40] ss:$8 sps:$4 sm:$0xff]  }
  0xb6   :  { %1061 = vmatpush1.bf16.msra.mxu0 %v3605_v20  ;;  %v3701_v20 = vld [vmem:[#allocation7 + $0x34] ss:$8 sps:$4 sm:$0xff]  }
  0xb7   :  { %1102 = vmatpush1.bf16.msra.mxu1 %v3608_v21  ;;  %1062 = vmatprep.subr.bf16.mxu0 %v3613_v22  ;;  %v3699_v21 = vld [vmem:[#allocation7 + $0x30] ss:$8 sps:$4 sm:$0xff]   ;;  %v3704_v22 = vld [vmem:[#allocation7 + $0x24] ss:$8 sps:$4 sm:$0xff]  }
  0xb8   :  { %1103 = vmatprep.subr.bf16.mxu1 %v3616_v23  ;;  %v3702_v23 = vld [vmem:[#allocation7 + $0x20] ss:$8 sps:$4 sm:$0xff]  }
  0xba   :  { %1063 = vmatpush1.bf16.msra.mxu0 %v3611_v24  ;;  %v3707_v24 = vld [vmem:[#allocation7 + $0x14] ss:$8 sps:$4 sm:$0xff]  }
  0xbb   :  { %1104 = vmatpush1.bf16.msra.mxu1 %v3614_v25  ;;  %1064 = vmatprep.subr.bf16.mxu0 %v3619_v26  ;;  %v3705_v25 = vld [vmem:[#allocation7 + $0x10] ss:$8 sps:$4 sm:$0xff]   ;;  %v3710_v26 = vld [vmem:[#allocation7 + $0x4] ss:$8 sps:$4 sm:$0xff]  }
  0xbc   :  { %1105 = vmatprep.subr.bf16.mxu1 %v3622_v27  ;;  %v3708_v27 = vld [vmem:[#allocation7] ss:$8 sps:$4 sm:$0xff]  }
  0xbe   :  { %1065 = vmatpush1.bf16.msra.mxu0 %v3617_v28  ;;  %v3713_v28 = vld [vmem:[#allocation7 + $0xf4] ss:$8 sps:$4 sm:$0xff]  }
  0xbf   :  { %1106 = vmatpush1.bf16.msra.mxu1 %v3620_v29  ;;  %1066 = vmatprep.subr.bf16.mxu0 %v3625_v30  ;;  %v3711_v29 = vld [vmem:[#allocation7 + $0xf0] ss:$8 sps:$4 sm:$0xff]   ;;  %v3716_v30 = vld [vmem:[#allocation7 + $0xe4] ss:$8 sps:$4 sm:$0xff]  }
  0xc0   :  { %1107 = vmatprep.subr.bf16.mxu1 %v3628_v31  ;;  %v3714_v31 = vld [vmem:[#allocation7 + $0xe0] ss:$8 sps:$4 sm:$0xff]  }
  0xc2   :  { %1067 = vmatpush1.bf16.msra.mxu0 %v3623_v32  ;;  %v3719_v32 = vld [vmem:[#allocation7 + $0xd4] ss:$8 sps:$4 sm:$0xff]  }
  0xc3   :  { %1108 = vmatpush1.bf16.msra.mxu1 %v3626_v33  ;;  %1068 = vmatprep.subr.bf16.mxu0 %v3631_v36  ;;  %v3717_v33 = vld [vmem:[#allocation7 + $0xd0] ss:$8 sps:$4 sm:$0xff]   ;;  %v3725_v36 = vld [vmem:[#allocation7 + $0xb4] ss:$8 sps:$4 sm:$0xff]  }
  0xc4   :  { %1109 = vmatprep.subr.bf16.mxu1 %v3634_v37  ;;  %v3723_v37 = vld [vmem:[#allocation7 + $0xb0] ss:$8 sps:$4 sm:$0xff]  }
  0xc6   :  { %1069 = vmatpush1.bf16.msra.mxu0 %v3629_v40  ;;  %v3731_v40 = vld [vmem:[#allocation7 + $0x94] ss:$8 sps:$4 sm:$0xff]  }
  0xc7   :  { %1110 = vmatpush1.bf16.msra.mxu1 %v3632_v41  ;;  %1070 = vmatprep.subr.bf16.mxu0 %v3637_v42  ;;  %v3729_v41 = vld [vmem:[#allocation7 + $0x90] ss:$8 sps:$4 sm:$0xff]   ;;  %v3734_v42 = vld [vmem:[#allocation7 + $0x84] ss:$8 sps:$4 sm:$0xff]  }
  0xc8   :  { %1111 = vmatprep.subr.bf16.mxu1 %v3640_v43  ;;  %v3732_v43 = vld [vmem:[#allocation7 + $0x80] ss:$8 sps:$4 sm:$0xff]  }
  0xca   :  { %1071 = vmatpush2.bf16.msra.mxu0 %v3635_v44  ;;  %v3735_v44 = vld [vmem:[#allocation10 + $0x118] ss:$20 sps:$4 sm:$0xff]  }
  0xcb   :  { %1112 = vmatpush2.bf16.msra.mxu1 %v3638_v45  ;;  %1072 = vmatprep.subr.bf16.mxu0 %v3643_v46  ;;  %v3737_v45 = vld [vmem:[#allocation10 + $0x11c] ss:$20 sps:$4 sm:$0xff]   ;;  %v3740_v46 = vld [vmem:[#allocation10 + $0x124] ss:$20 sps:$4 sm:$0xff]  }
  0xcc   :  { %1113 = vmatprep.subr.bf16.mxu1 %v3646_v47  ;;  %v3743_v47 = vld [vmem:[#allocation10 + $0xf4] ss:$20 sps:$4 sm:$0xff]  }
  0xce   :  { %1073 = vmatpush2.bf16.msra.mxu0 %v3641_v48  ;;  %v3741_v48 = vld [vmem:[#allocation10 + $0xf0] ss:$20 sps:$4 sm:$0xff]  }
  0xcf   :  { %1114 = vmatpush2.bf16.msra.mxu1 %v3644_v49  ;;  %1074 = vmatprep.subr.bf16.mxu0 %v3649_v50  ;;  %v3749_v49 = vld [vmem:[#allocation10 + $0xcc] ss:$20 sps:$4 sm:$0xff]   ;;  %v3747_v50 = vld [vmem:[#allocation10 + $0xc8] ss:$20 sps:$4 sm:$0xff]  }
  0xd0   :  { %1115 = vmatprep.subr.bf16.mxu1 %v3652_v51  ;;  %v3755_v51 = vld [vmem:[#allocation10 + $0xa4] ss:$20 sps:$4 sm:$0xff]  }
  0xd2   :  { %1075 = vmatpush2.bf16.msra.mxu0 %v3647_v52  ;;  %v3753_v52 = vld [vmem:[#allocation10 + $0xa0] ss:$20 sps:$4 sm:$0xff]  }
  0xd3   :  { %1116 = vmatpush2.bf16.msra.mxu1 %v3650_v53  ;;  %1076 = vmatprep.subr.bf16.mxu0 %v3655_v54  ;;  %v3761_v53 = vld [vmem:[#allocation10 + $0x7c] ss:$20 sps:$4 sm:$0xff]   ;;  %v3759_v54 = vld [vmem:[#allocation10 + $0x78] ss:$20 sps:$4 sm:$0xff]  }
  0xd4   :  { %1117 = vmatprep.subr.bf16.mxu1 %v3658_v55  ;;  %v3767_v55 = vld [vmem:[#allocation10 + $0x54] ss:$20 sps:$4 sm:$0xff]  }
  0xd6   :  { %1077 = vmatpush2.bf16.msra.mxu0 %v3653_v56  ;;  %v3765_v56 = vld [vmem:[#allocation10 + $0x50] ss:$20 sps:$4 sm:$0xff]  }
  0xd7   :  { %1118 = vmatpush2.bf16.msra.mxu1 %v3656_v57  ;;  %1078 = vmatprep.subr.bf16.mxu0 %v3661_v58  ;;  %v3773_v57 = vld [vmem:[#allocation10 + $0x2c] ss:$20 sps:$4 sm:$0xff]   ;;  %v3771_v58 = vld [vmem:[#allocation10 + $0x28] ss:$20 sps:$4 sm:$0xff]  }
  0xd8   :  { %1119 = vmatprep.subr.bf16.mxu1 %v3664_v59  ;;  %v3779_v59 = vld [vmem:[#allocation10 + $0x4] ss:$20 sps:$4 sm:$0xff]  }
  0xda   :  { %1079 = vmatpush2.bf16.msra.mxu0 %v3659_v60  ;;  %v3777_v60 = vld [vmem:[#allocation10] ss:$20 sps:$4 sm:$0xff]  }
  0xdb   :  { %1120 = vmatpush2.bf16.msra.mxu1 %v3662_v61  ;;  %1080 = vmatprep.subr.bf16.mxu0 %v3667_v62  ;;  %v3785_v61 = vld [vmem:[#allocation10 + $0x25c] ss:$20 sps:$4 sm:$0xff]   ;;  %v3783_v62 = vld [vmem:[#allocation10 + $0x258] ss:$20 sps:$4 sm:$0xff]  }
  0xdc   :  { %1121 = vmatprep.subr.bf16.mxu1 %v3670_v63  ;;  %v3791_v63 = vld [vmem:[#allocation10 + $0x234] ss:$20 sps:$4 sm:$0xff]  }
  0xde   :  { %1081 = vmatpush2.bf16.msra.mxu0 %v3665_v0  ;;  %v3789_v0 = vld [vmem:[#allocation10 + $0x230] ss:$20 sps:$4 sm:$0xff]  }
  0xdf   :  { %1122 = vmatpush2.bf16.msra.mxu1 %v3668_v1  ;;  %1082 = vmatprep.subr.bf16.mxu0 %v3673_v2  ;;  %v3797_v1 = vld [vmem:[#allocation10 + $0x20c] ss:$20 sps:$4 sm:$0xff]   ;;  %v3795_v2 = vld [vmem:[#allocation10 + $0x208] ss:$20 sps:$4 sm:$0xff]  }
  0xe0   :  { %1123 = vmatprep.subr.bf16.mxu1 %v3676_v3  ;;  %v3803_v3 = vld [vmem:[#allocation10 + $0x1e4] ss:$20 sps:$4 sm:$0xff]  }
  0xe2   :  { %1083 = vmatpush2.bf16.msra.mxu0 %v3671_v4  ;;  %v3801_v4 = vld [vmem:[#allocation10 + $0x1e0] ss:$20 sps:$4 sm:$0xff]  }
  0xe3   :  { %1124 = vmatpush2.bf16.msra.mxu1 %v3674_v5  ;;  %1084 = vmatprep.subr.bf16.mxu0 %v3679_v6  ;;  %v3809_v5 = vld [vmem:[#allocation10 + $0x1bc] ss:$20 sps:$4 sm:$0xff]   ;;  %v3807_v6 = vld [vmem:[#allocation10 + $0x1b8] ss:$20 sps:$4 sm:$0xff]  }
  0xe4   :  { %1125 = vmatprep.subr.bf16.mxu1 %v3682_v7  ;;  %v3815_v7 = vld [vmem:[#allocation10 + $0x194] ss:$20 sps:$4 sm:$0xff]  }
  0xe6   :  { %1085 = vmatpush2.bf16.msra.mxu0 %v3677_v8  ;;  %v3813_v8 = vld [vmem:[#allocation10 + $0x190] ss:$20 sps:$4 sm:$0xff]  }
  0xe7   :  { %1126 = vmatpush2.bf16.msra.mxu1 %v3680_v9  ;;  %1344 = vmatprep.subr.bf16.mxu0 %v3689_v13 }
  0xe8   :  { %1928 = vmatprep.subr.bf16.mxu1 %v3737_v45  ;;  %v3746_v45 = vld [vmem:[#allocation10 + $0xfc] ss:$20 sps:$4 sm:$0xff]  }
  0xe9   :  { %1087 = vmatmul.mubr.bf16.vlgmr.msra.gmra.mxu0 %v3049_v10 }
  0xea   :  { %1128 = vmatmul.mubr.bf16.vlgmr.msra.gmra.mxu1 %v3051_v11  ;;  %1345 = vmatpush1.bf16.msra.mxu0 %v3687_v12 }
  0xeb   :  { %1346 = vmatprep.subr.bf16.mxu0 %v3692_v14  ;;  %1929 = vmatpush1.bf16.msra.mxu1 %v3735_v44 }
  0xec   :  { %1930 = vmatprep.subr.bf16.mxu1 %v3743_v47  ;;  %v3752_v47 = vld [vmem:[#allocation10 + $0xd4] ss:$20 sps:$4 sm:$0xff]  }
  0xee   :  { %1347 = vmatpush1.bf16.msra.mxu0 %v3690_v15 }
  0xef   :  { %1348 = vmatprep.subr.bf16.mxu0 %v3695_v16  ;;  %1931 = vmatpush1.bf16.msra.mxu1 %v3741_v48  ;;  %v3750_v48 = vld [vmem:[#allocation10 + $0xd0] ss:$20 sps:$4 sm:$0xff]  }
  0xf0   :  { %1932 = vmatprep.subr.bf16.mxu1 %v3749_v49  ;;  %v3758_v49 = vld [vmem:[#allocation10 + $0xac] ss:$20 sps:$4 sm:$0xff]  }
  0xf2   :  { %1349 = vmatpush1.bf16.msra.mxu0 %v3693_v17  ;;  %v294_v17 = vlaneseq }
  0xf3   :  { %1350 = vmatprep.subr.bf16.mxu0 %v3698_v18  ;;  %1933 = vmatpush1.bf16.msra.mxu1 %v3747_v50  ;;  %v3756_v50 = vld [vmem:[#allocation10 + $0xa8] ss:$20 sps:$4 sm:$0xff]  }
  0xf4   :  { %1934 = vmatprep.subr.bf16.mxu1 %v3755_v51  ;;  %v4271_v18 = vshrl.u32 %v294_v17, 7  ;;  %v3764_v51 = vld [vmem:[#allocation10 + $0x84] ss:$20 sps:$4 sm:$0xff]  }
  0xf6   :  { %1351 = vmatpush1.bf16.msra.mxu0 %v3696_v19  ;;  %v4274_v19 = vsub.s32 0, %v4271_v18 }
  0xf7   :  { %1352 = vmatprep.subr.bf16.mxu0 %v3701_v20  ;;  %1935 = vmatpush1.bf16.msra.mxu1 %v3753_v52  ;;  %v292_v20 = vld [vmem:[%s4349_s2] sm:$0x3]  ;;  %v3762_v52 = vld [vmem:[#allocation10 + $0x80] ss:$20 sps:$4 sm:$0xff]  }
  0xf8   :  { %1936 = vmatprep.subr.bf16.mxu1 %v3761_v53  ;;  %v3770_v53 = vld [vmem:[#allocation10 + $0x5c] ss:$20 sps:$4 sm:$0xff]  }
  0xfa   :  { %1353 = vmatpush1.bf16.msra.mxu0 %v3699_v21  ;;  %v4280_v21 = vsub.s32 1, %v4271_v18 }
  0xfb   :  { %1354 = vmatprep.subr.bf16.mxu0 %v3704_v22  ;;  %1937 = vmatpush1.bf16.msra.mxu1 %v3759_v54  ;;  %v297_v22 = vrot.slane %v292_v20, %v4274_v19  ;;  %v3768_v54 = vld [vmem:[#allocation10 + $0x58] ss:$20 sps:$4 sm:$0xff]  }
  0xfc   :  { %1938 = vmatprep.subr.bf16.mxu1 %v3767_v55  ;;  %v3776_v55 = vld [vmem:[#allocation10 + $0x34] ss:$20 sps:$4 sm:$0xff]  }
  0xfe   :  { %1355 = vmatpush1.bf16.msra.mxu0 %v3702_v23  ;;  %v301_v23 = vrot.slane %v292_v20, %v4280_v21 }
  0xff   :  { %1356 = vmatprep.subr.bf16.mxu0 %v3707_v24  ;;  %1939 = vmatpush1.bf16.msra.mxu1 %v3765_v56  ;;  %v3774_v56 = vld [vmem:[#allocation10 + $0x30] ss:$20 sps:$4 sm:$0xff]  }
 0x100   :  { %1940 = vmatprep.subr.bf16.mxu1 %v3773_v57  ;;  %v3782_v57 = vld [vmem:[#allocation10 + $0xc] ss:$20 sps:$4 sm:$0xff]  }
 0x102   :  { %1357 = vmatpush1.bf16.msra.mxu0 %v3705_v25 }
 0x103   :  { %1358 = vmatprep.subr.bf16.mxu0 %v3710_v26  ;;  %1941 = vmatpush1.bf16.msra.mxu1 %v3771_v58  ;;  %v3780_v58 = vld [vmem:[#allocation10 + $0x8] ss:$20 sps:$4 sm:$0xff]  }
 0x104   :  { %1942 = vmatprep.subr.bf16.mxu1 %v3779_v59  ;;  %v3788_v59 = vld [vmem:[#allocation10 + $0x264] ss:$20 sps:$4 sm:$0xff]  }
 0x106   :  { %1359 = vmatpush1.bf16.msra.mxu0 %v3708_v27 }
 0x107   :  { %1360 = vmatprep.subr.bf16.mxu0 %v3713_v28  ;;  %1943 = vmatpush1.bf16.msra.mxu1 %v3777_v60  ;;  %v3786_v60 = vld [vmem:[#allocation10 + $0x260] ss:$20 sps:$4 sm:$0xff]  }
 0x108   :  { %1944 = vmatprep.subr.bf16.mxu1 %v3785_v61  ;;  %v3794_v61 = vld [vmem:[#allocation10 + $0x23c] ss:$20 sps:$4 sm:$0xff]  }
 0x10a   :  { %1361 = vmatpush2.bf16.msra.mxu0 %v3711_v29 }
 0x10b   :  { %1362 = vmatprep.subr.bf16.mxu0 %v3716_v30  ;;  %1945 = vmatpush2.bf16.msra.mxu1 %v3783_v62  ;;  %v3792_v62 = vld [vmem:[#allocation10 + $0x238] ss:$20 sps:$4 sm:$0xff]  }
 0x10c   :  { %1946 = vmatprep.subr.bf16.mxu1 %v3791_v63  ;;  %v3800_v63 = vld [vmem:[#allocation10 + $0x214] ss:$20 sps:$4 sm:$0xff]  }
 0x10e   :  { %1363 = vmatpush2.bf16.msra.mxu0 %v3714_v31 }
 0x10f   :  { %1364 = vmatprep.subr.bf16.mxu0 %v3719_v32  ;;  %1947 = vmatpush2.bf16.msra.mxu1 %v3789_v0  ;;  %v3798_v0 = vld [vmem:[#allocation10 + $0x210] ss:$20 sps:$4 sm:$0xff]  }
 0x110   :  { %1948 = vmatprep.subr.bf16.mxu1 %v3797_v1  ;;  %v3806_v1 = vld [vmem:[#allocation10 + $0x1ec] ss:$20 sps:$4 sm:$0xff]  }
 0x112   :  { %1365 = vmatpush2.bf16.msra.mxu0 %v3717_v33 }
 0x113   :  { %1366 = vmatprep.subr.bf16.mxu0 %v3722_v34  ;;  %1949 = vmatpush2.bf16.msra.mxu1 %v3795_v2  ;;  %v3804_v2 = vld [vmem:[#allocation10 + $0x1e8] ss:$20 sps:$4 sm:$0xff]  }
 0x114   :  { %1950 = vmatprep.subr.bf16.mxu1 %v3803_v3  ;;  %v3812_v3 = vld [vmem:[#allocation10 + $0x1c4] ss:$20 sps:$4 sm:$0xff]  }
 0x116   :  { %1367 = vmatpush2.bf16.msra.mxu0 %v3720_v35 }
 0x117   :  { %1368 = vmatprep.subr.bf16.mxu0 %v3725_v36  ;;  %1951 = vmatpush2.bf16.msra.mxu1 %v3801_v4  ;;  %v3810_v4 = vld [vmem:[#allocation10 + $0x1c0] ss:$20 sps:$4 sm:$0xff]  }
 0x118   :  { %1952 = vmatprep.subr.bf16.mxu1 %v3809_v5  ;;  %v3818_v5 = vld [vmem:[#allocation10 + $0x19c] ss:$20 sps:$4 sm:$0xff]  }
 0x11a   :  { %1369 = vmatpush2.bf16.msra.mxu0 %v3723_v37 }
 0x11b   :  { %1370 = vmatprep.subr.bf16.mxu0 %v3728_v38  ;;  %1953 = vmatpush2.bf16.msra.mxu1 %v3807_v6  ;;  %v3816_v6 = vld [vmem:[#allocation10 + $0x198] ss:$20 sps:$4 sm:$0xff]  }
 0x11c   :  { %1954 = vmatprep.subr.bf16.mxu1 %v3815_v7  ;;  %v3821_v7 = vld [vmem:[#allocation10 + $0x16c] ss:$20 sps:$4 sm:$0xff]  }
 0x11e   :  { %1371 = vmatpush2.bf16.msra.mxu0 %v3726_v39 }
 0x11f   :  { %1372 = vmatprep.subr.bf16.mxu0 %v3731_v40  ;;  %1955 = vmatpush2.bf16.msra.mxu1 %v3813_v8  ;;  %v3819_v8 = vld [vmem:[#allocation10 + $0x168] ss:$20 sps:$4 sm:$0xff]  }
 0x120   :  { %1956 = vmatprep.subr.bf16.mxu1 %v3821_v7  ;;  %v1501_v7 = vsub.s32 3, %v4271_v18 }
 0x122   :  { %1373 = vmatpush2.bf16.msra.mxu0 %v3729_v41 }
 0x123   :  { %1374 = vmatprep.subr.bf16.mxu0 %v3734_v42  ;;  %1957 = vmatpush2.bf16.msra.mxu1 %v3819_v8 }
 0x126   :  { %1375 = vmatpush2.bf16.msra.mxu0 %v3732_v43  ;;  %v3738_v43 = vld [vmem:[#allocation10 + $0x120] ss:$20 sps:$4 sm:$0xff]  }
 0x127   :  { %1969 = vmatprep.subr.bf16.mxu0 %v3740_v46  ;;  %v3744_v46 = vld [vmem:[#allocation10 + $0xf8] ss:$20 sps:$4 sm:$0xff]  }
 0x169   :  { %v1006_v9 = vpop.f32.mrf.mxu0 }
 0x16a   :  { %v1047_v10 = vpop.f32.mrf.mxu1  ;;  %v1007_v24 = vadd.f32 %v1006_v9, %v297_v22  ;;  %v3824_v9 = vld [vmem:[#allocation10 + $0x174] ss:$20 sps:$4 sm:$0xff]  }
 0x16b   :  { %v1008_v11 = vpop.f32.mrf.mxu0 }
 0x16c   :  { %v1049_v12 = vpop.f32.mrf.mxu1  ;;  %v1009_v25 = vadd.f32 %v1008_v11, %v301_v23  ;;  %v1048_v26 = vadd.f32 %v1047_v10, %v1007_v24  ;;  %v3822_v10 = vld [vmem:[#allocation10 + $0x170] ss:$20 sps:$4 sm:$0xff]  }
 0x16d   :  { %v1010_v13 = vpop.f32.mrf.mxu0  ;;  %v3827_v11 = vld [vmem:[#allocation10 + $0x144] ss:$20 sps:$4 sm:$0xff]  }
 0x16e   :  { %v1051_v14 = vpop.f32.mrf.mxu1  ;;  %v1050_v29 = vadd.f32 %v1049_v12, %v1009_v25  ;;  %v3825_v12 = vld [vmem:[#allocation10 + $0x140] ss:$20 sps:$4 sm:$0xff]   ;;  %1958 = vmatprep.subr.bf16.mxu1 %v3827_v11 }
 0x16f   :  { %v1011_v15 = vpop.f32.mrf.mxu0  ;;  %v3830_v13 = vld [vmem:[#allocation10 + $0x14c] ss:$20 sps:$4 sm:$0xff]   ;;  %v3828_v14 = vld [vmem:[#allocation10 + $0x148] ss:$20 sps:$4 sm:$0xff]   ;;  %1959 = vmatpush2.bf16.msra.mxu1 %v3825_v12 }
 0x170   :  { %v1052_v16 = vpop.f32.mrf.mxu1  ;;  %v3831_v15 = vld [vmem:[#allocation10 + $0x268] ss:$20 sps:$4 sm:$0xff]  }
 0x171   :  { %3393 = vmatprep.subr.bf16.mxu1 %v3831_v15  ;;  %v1172_v16 = vld [vmem:[#allocation8] sm:$0x3] }
 0x172   :  { %v1177_v17 = vrot.slane %v1172_v16, %v4274_v19  ;;  %v1181_v20 = vrot.slane %v1172_v16, %v4280_v21 }
 0x1a9   :  { %v1088_v27 = vpop.f32.mrf.mxu0 }
 0x1aa   :  { %v1129_v28 = vpop.f32.mrf.mxu1  ;;  %v1089_v30 = vadd.f32 %v1088_v27, %v1048_v26 }
 0x1ab   :  { %v1090_v31 = vpop.f32.mrf.mxu0 }
 0x1ac   :  { %v1131_v32 = vpop.f32.mrf.mxu1  ;;  %v1130_v33 = vadd.f32 %v1129_v28, %v1089_v30  ;;  %v1091_v34 = vadd.f32 %v1090_v31, %v1050_v29  ;;  %v3832_v31 = vld [vmem:[#allocation10 + $0x128] ss:$20 sps:$4 sm:$0xff]  }
 0x1ad   :  { %v1092_v35 = vpop.f32.mrf.mxu0 }
 0x1ae   :  { %v1133_v36 = vpop.f32.mrf.mxu1  ;;  %v1132_v37 = vadd.f32 %v1131_v32, %v1091_v34  ;;  %v1136_v38 = vmax.f32 %v1130_v33, 0.0  ;;  %v3833_v33 = vld [vmem:[#allocation10 + $0x240] ss:$20 sps:$4 sm:$0xff]   ;;  %v3835_v35 = vld [vmem:[#allocation10 + $0x218] ss:$20 sps:$4 sm:$0xff]  }
 0x1af   :  { %v1093_v39 = vpop.f32.mrf.mxu0  ;;  %v3834_v34 = vld [vmem:[#allocation10 + $0x100] ss:$20 sps:$4 sm:$0xff]   ;;  %v3836_v36 = vld [vmem:[#allocation10 + $0xd8] ss:$20 sps:$4 sm:$0xff]  }
 0x1b0   :  { %v1134_v40 = vpop.f32.mrf.mxu1  ;;  %v1137_v41 = vmax.f32 %v1132_v37, 0.0  ;;  %v1138_v44 = vpack.c.bf16 %v1136_v38, %v1136_v38  ;;  %v3837_v37 = vld [vmem:[#allocation10 + $0x1f0] ss:$20 sps:$4 sm:$0xff]   ;;  %v3839_v39 = vld [vmem:[#allocation10 + $0x1c8] ss:$20 sps:$4 sm:$0xff]  }
 0x1b1   :  { %v3838_v38 = vld [vmem:[#allocation10 + $0xb0] ss:$20 sps:$4 sm:$0xff]   ;;  %v3840_v40 = vld [vmem:[#allocation10 + $0x88] ss:$20 sps:$4 sm:$0xff]  }
 0x1b2   :  { %v1139_v42 = vpack.c.bf16 %v1137_v41, %v1137_v41  ;;  %v3841_v41 = vld [vmem:[#allocation10 + $0x1a0] ss:$20 sps:$4 sm:$0xff]  }
 0x1b4   :  { %1376 = vmatprep.mubr.bf16.mxu0 %v1139_v42  ;;  %v3842_v42 = vld [vmem:[#allocation10 + $0x60] ss:$20 sps:$4 sm:$0xff]  }
 0x1b5   :  { %1377 = vmatmul.mubr.bf16.vlgmr.msra.gmra.mxu0 %v1138_v44  ;;  %v3844_v44 = vld [vmem:[#allocation10 + $0x38] ss:$20 sps:$4 sm:$0xff]  }
 0x1b6   :  { %1970 = vmatpush1.bf16.msra.mxu0 %v3738_v43  ;;  %v3843_v43 = vld [vmem:[#allocation10 + $0x178] ss:$20 sps:$4 sm:$0xff]  }
 0x1b7   :  { %1971 = vmatprep.subr.bf16.mxu0 %v3746_v45  ;;  %v3845_v45 = vld [vmem:[#allocation10 + $0x150] ss:$20 sps:$4 sm:$0xff]  }
 0x1ba   :  { %1972 = vmatpush1.bf16.msra.mxu0 %v3744_v46  ;;  %v3846_v46 = vld [vmem:[#allocation10 + $0x10] ss:$20 sps:$4 sm:$0xff]  }
 0x1bb   :  { %1973 = vmatprep.subr.bf16.mxu0 %v3752_v47  ;;  %v3847_v47 = vld [vmem:[#allocation11 + $0x78] sm:$0xff]  }
 0x1be   :  { %1974 = vmatpush1.bf16.msra.mxu0 %v3750_v48  ;;  %v3848_v48 = vld [vmem:[#allocation11 + $0x38] sm:$0xff]  }
 0x1bf   :  { %1975 = vmatprep.subr.bf16.mxu0 %v3758_v49  ;;  %v3849_v49 = vld [vmem:[#allocation11 + $0x70] sm:$0xff]  }
 0x1c2   :  { %1976 = vmatpush1.bf16.msra.mxu0 %v3756_v50  ;;  %v3850_v50 = vld [vmem:[#allocation11 + $0x30] sm:$0xff]  }
 0x1c3   :  { %1977 = vmatprep.subr.bf16.mxu0 %v3764_v51  ;;  %v3851_v51 = vld [vmem:[#allocation11 + $0x68] sm:$0xff]  }
 0x1c6   :  { %1978 = vmatpush1.bf16.msra.mxu0 %v3762_v52  ;;  %v3852_v52 = vld [vmem:[#allocation11 + $0x28] sm:$0xff]  }
 0x1c7   :  { %1979 = vmatprep.subr.bf16.mxu0 %v3770_v53  ;;  %v3853_v53 = vld [vmem:[#allocation11 + $0x60] sm:$0xff]  }
 0x1ca   :  { %1980 = vmatpush1.bf16.msra.mxu0 %v3768_v54  ;;  %v3854_v54 = vld [vmem:[#allocation11 + $0x20] sm:$0xff]  }
 0x1cb   :  { %1981 = vmatprep.subr.bf16.mxu0 %v3776_v55  ;;  %v3855_v55 = vld [vmem:[#allocation11 + $0x58] sm:$0xff]  }
 0x1ce   :  { %1982 = vmatpush1.bf16.msra.mxu0 %v3774_v56  ;;  %v3856_v56 = vld [vmem:[#allocation11 + $0x18] sm:$0xff]  }
 0x1cf   :  { %1983 = vmatprep.subr.bf16.mxu0 %v3782_v57  ;;  %v3857_v57 = vld [vmem:[#allocation11 + $0x50] sm:$0xff]  }
 0x1d2   :  { %1984 = vmatpush1.bf16.msra.mxu0 %v3780_v58  ;;  %v3858_v58 = vld [vmem:[#allocation11 + $0x10] sm:$0xff]  }
 0x1d3   :  { %1985 = vmatprep.subr.bf16.mxu0 %v3788_v59  ;;  %v3859_v59 = vld [vmem:[#allocation11 + $0x48] sm:$0xff]  }
 0x1d6   :  { %1986 = vmatpush2.bf16.msra.mxu0 %v3786_v60  ;;  %v3860_v60 = vld [vmem:[#allocation11 + $0x8] sm:$0xff]  }
 0x1d7   :  { %1987 = vmatprep.subr.bf16.mxu0 %v3794_v61  ;;  %v3861_v61 = vld [vmem:[#allocation11 + $0x40] sm:$0xff]  }
 0x1da   :  { %1988 = vmatpush2.bf16.msra.mxu0 %v3792_v62  ;;  %v3862_v62 = vld [vmem:[#allocation11] sm:$0xff]  }
 0x1db   :  { %1989 = vmatprep.subr.bf16.mxu0 %v3800_v63  ;;  %v3863_v63 = vld [vmem:[#allocation13 + $0x38] sm:$0xff]  }
 0x1de   :  { %1990 = vmatpush2.bf16.msra.mxu0 %v3798_v0  ;;  %v4133_v0 = vmov 0.0  }
 0x1df   :  { %1991 = vmatprep.subr.bf16.mxu0 %v3806_v1  ;;  %v3864_v1 = vld [vmem:[#allocation13 + $0x30] sm:$0xff]  }
 0x1e2   :  { %1992 = vmatpush2.bf16.msra.mxu0 %v3804_v2  ;;  %v3865_v2 = vld [vmem:[#allocation13 + $0x28] sm:$0xff]  }
 0x1e3   :  { %1993 = vmatprep.subr.bf16.mxu0 %v3812_v3  ;;  %v3866_v3 = vld [vmem:[#allocation13 + $0x20] sm:$0xff]  }
 0x1e6   :  { %1994 = vmatpush2.bf16.msra.mxu0 %v3810_v4  ;;  %v3867_v4 = vld [vmem:[#allocation13 + $0x18] sm:$0xff]  }
 0x1e7   :  { %1995 = vmatprep.subr.bf16.mxu0 %v3818_v5  ;;  %v1497_v5 = vsub.s32 2, %v4271_v18 }
 0x1ea   :  { %1996 = vmatpush2.bf16.msra.mxu0 %v3816_v6  ;;  %v1485_v6 = vld [vmem:[%s4353_s6] sm:$0x1f] }
 0x1eb   :  { %1997 = vmatprep.subr.bf16.mxu0 %v3824_v9  ;;  %v1490_v8 = vrot.slane %v1485_v6, %v4274_v19  ;;  %v1498_v9 = vrot.slane %v1485_v6, %v1497_v5  ;;  %v1502_v11 = vrot.slane %v1485_v6, %v1501_v7 }
 0x1ee   :  { %1998 = vmatpush2.bf16.msra.mxu0 %v3822_v10  ;;  %v1494_v10 = vrot.slane %v1485_v6, %v4280_v21 }
 0x1ef   :  { %1999 = vmatprep.subr.bf16.mxu0 %v3830_v13 }
 0x1f2   :  { %2000 = vmatpush2.bf16.msra.mxu0 %v3828_v14  ;;  %v3391_v14 = vld [vmem:[%s4360_s13] ss:$0 sm:$0xff] }
 0x1f3   :  { %3446 = vmatprep.subr.bf16.mxu0 %v4133_v0 }
 0x275   :  { %v1378_v22 = vpop.f32.mrf.mxu0 }
 0x276   :  { %v1379_v23 = vadd.f32 %v1378_v22, %v1177_v17  ;;  %v3392_v17 = vld [vmem:[%s4361_s14] ss:$0 sm:$0xff] }
 0x277   :  { %v1380_v24 = vpop.f32.mrf.mxu0 }
 0x278   :  { %v1381_v25 = vadd.f32 %v1380_v24, %v1181_v20  ;;  %v1385_v26 = vmax.f32 %v1379_v23, 0.0 }
 0x279   :  { %v1382_v27 = vpop.f32.mrf.mxu0 }
 0x27a   :  { %v1386_v28 = vmax.f32 %v1381_v25, 0.0  ;;  %v1387_v32 = vpack.c.bf16 %v1385_v26, %v1385_v26 }
 0x27b   :  { %v1383_v29 = vpop.f32.mrf.mxu0 }
 0x27c   :  { %v1388_v30 = vpack.c.bf16 %v1386_v28, %v1386_v28 }
 0x27e   :  { %1960 = vmatprep.mubr.bf16.mxu1 %v1388_v30  ;;  %2001 = vmatprep.mubr.bf16.mxu0 %v1388_v30 }
 0x27f   :  { %1961 = vmatmul.mubr.bf16.vlgmr.msra.gmra.mxu1 %v1387_v32  ;;  %2002 = vmatmul.mubr.bf16.vlgmr.msra.gmra.mxu0 %v1387_v32 }
 0x280   :  { %3394 = vmatpush3.bf16.msra.mxu1 %v3832_v31  ;;  %2042 = vmatprep.mubr.bf16.mxu1 %v1388_v30 }
 0x281   :  { %3395 = vmatprep.subr.bf16.mxu1 %v3833_v33  ;;  %3447 = vmatpush3.bf16.msra.mxu0 %v3863_v63  ;;  %v1505_v33 = vsub.s32 4, %v4271_v18 }
 0x282   :  { %3448 = vmatprep.subr.bf16.mxu0 %v4133_v0  ;;  %3462 = vmatprep.mubr.msk.bf16.mxu0 %vm4134_vm0, %v4133_v0 }
 0x284   :  { %3396 = vmatpush3.bf16.msra.mxu1 %v3834_v34 }
 0x285   :  { %3397 = vmatprep.subr.bf16.mxu1 %v3835_v35  ;;  %3449 = vmatpush3.bf16.msra.mxu0 %v3864_v1  ;;  %v1506_v35 = vrot.slane %v1485_v6, %v1505_v33  ;;  %v2370_v1 = vld [vmem:[#allocation14 + $0xe0] sm:$0xff] }
 0x286   :  { %3450 = vmatprep.subr.bf16.mxu0 %v4133_v0  ;;  %v2362_v6 = vld [vmem:[#allocation14 + $0xa0] sm:$0xff] }
 0x288   :  { %3398 = vmatpush3.bf16.msra.mxu1 %v3836_v36 }
 0x289   :  { %3399 = vmatprep.subr.bf16.mxu1 %v3837_v37  ;;  %3451 = vmatpush3.bf16.msra.mxu0 %v3865_v2 }
 0x28a   :  { %3452 = vmatprep.subr.bf16.mxu0 %v4133_v0 }
 0x28c   :  { %3400 = vmatpush3.bf16.msra.mxu1 %v3838_v38 }
 0x28d   :  { %3401 = vmatprep.subr.bf16.mxu1 %v3839_v39  ;;  %3453 = vmatpush3.bf16.msra.mxu0 %v3866_v3 }
 0x28e   :  { %3454 = vmatprep.subr.bf16.mxu0 %v4133_v0 }
 0x290   :  { %3402 = vmatpush3.bf16.msra.mxu1 %v3840_v40 }
 0x291   :  { %3403 = vmatprep.subr.bf16.mxu1 %v3841_v41  ;;  %3455 = vmatpush3.bf16.msra.mxu0 %v3867_v4  ;;  %v3868_v41 = vld [vmem:[#allocation13 + $0x10] sm:$0xff]   ;;  %v2358_v4 = vld [vmem:[#allocation14 + $0x80] sm:$0xff] }
 0x292   :  { %3456 = vmatprep.subr.bf16.mxu0 %v4133_v0 }
 0x294   :  { %3404 = vmatpush3.bf16.msra.mxu1 %v3842_v42  ;;  %v3869_v42 = vld [vmem:[#allocation13 + $0x8] sm:$0xff]  }
 0x295   :  { %3405 = vmatprep.subr.bf16.mxu1 %v3843_v43  ;;  %3457 = vmatpush3.bf16.msra.mxu0 %v3868_v41  ;;  %v3870_v43 = vld [vmem:[#allocation13] sm:$0xff]  }
 0x296   :  { %3458 = vmatprep.subr.bf16.mxu0 %v4133_v0 }
 0x298   :  { %3406 = vmatpush3.bf16.msra.mxu1 %v3844_v44  ;;  %v2398_v44 = vld [vmem:[#allocation14 + $0x1c0] sm:$0xff] }
 0x299   :  { %3407 = vmatprep.subr.bf16.mxu1 %v3845_v45  ;;  %3459 = vmatpush3.bf16.msra.mxu0 %v3869_v42  ;;  %v2402_v45 = vld [vmem:[#allocation14 + $0x1e0] sm:$0xff]  ;;  %v2359_v42 = vld [vmem:[#allocation14 + $0x88] sm:$0xff] }
 0x29a   :  { %3460 = vmatprep.subr.bf16.mxu0 %v4133_v0  ;;  %v2366_v0 = vld [vmem:[#allocation14 + $0xc0] sm:$0xff] }
 0x29b   :  { %v3344_v2 = vcombine.high %v2366_v0, %v2370_v1  ;;  %v3343_v3 = vcombine.low %v2366_v0, %v2370_v1 }
 0x29c   :  { %3408 = vmatpush3.bf16.msra.mxu1 %v3846_v46  ;;  %v2399_v46 = vld [vmem:[#allocation14 + $0x1c8] sm:$0xff] }
 0x29d   :  { %3415 = vmatprep.subr.bf16.mxu1 %v3847_v47  ;;  %3461 = vmatpush3.bf16.msra.mxu0 %v3870_v43  ;;  %v3375_v47 = vcombine.low %v2398_v44, %v2402_v45  ;;  %v2363_v43 = vld [vmem:[#allocation14 + $0xa8] sm:$0xff] }
 0x29f   :  { %2043 = vmatmul.mubr.bf16.vlgmr.msra.gmra.mxu1 %v1387_v32 }
 0x2a0   :  { %3416 = vmatpush3.bf16.msra.mxu1 %v3848_v48  ;;  %v3376_v48 = vcombine.high %v2398_v44, %v2402_v45  ;;  %v3338_v45 = vcombine.high %v2359_v42, %v2363_v43 }
 0x2a1   :  { %3417 = vmatprep.subr.bf16.mxu1 %v3849_v49  ;;  %v2403_v49 = vld [vmem:[#allocation14 + $0x1e8] sm:$0xff] }
 0x2a4   :  { %3418 = vmatpush3.bf16.msra.mxu1 %v3850_v50  ;;  %v2390_v50 = vld [vmem:[#allocation14 + $0x180] sm:$0xff] }
 0x2a5   :  { %3419 = vmatprep.subr.bf16.mxu1 %v3851_v51  ;;  %v2394_v51 = vld [vmem:[#allocation14 + $0x1a0] sm:$0xff] }
 0x2a8   :  { %3420 = vmatpush3.bf16.msra.mxu1 %v3852_v52  ;;  %v3377_v52 = vcombine.low %v2399_v46, %v2403_v49 }
 0x2a9   :  { %3421 = vmatprep.subr.bf16.mxu1 %v3853_v53  ;;  %v3378_v53 = vcombine.high %v2399_v46, %v2403_v49  ;;  %v2351_v46 = vld [vmem:[#allocation14 + $0x48] sm:$0xff] }
 0x2ab   :  { %2809 = vmatprep.subr.bf16.mxu0 %v3378_v53  ;;  %v2343_v53 = vld [vmem:[#allocation14 + $0x8] sm:$0xff] }
 0x2ac   :  { %3422 = vmatpush3.bf16.msra.mxu1 %v3854_v54  ;;  %v3368_v54 = vcombine.high %v2390_v50, %v2394_v51 }
 0x2ad   :  { %3423 = vmatprep.subr.bf16.mxu1 %v3855_v55  ;;  %v3367_v55 = vcombine.low %v2390_v50, %v2394_v51  ;;  %v2342_v51 = vld [vmem:[#allocation14] sm:$0xff] }
 0x2b0   :  { %3424 = vmatpush3.bf16.msra.mxu1 %v3856_v56  ;;  %v2382_v56 = vld [vmem:[#allocation14 + $0x140] sm:$0xff] }
 0x2b1   :  { %3425 = vmatprep.subr.bf16.mxu1 %v3857_v57  ;;  %v2386_v57 = vld [vmem:[#allocation14 + $0x160] sm:$0xff] }
 0x2b4   :  { %3426 = vmatpush3.bf16.msra.mxu1 %v3858_v58  ;;  %v3360_v58 = vcombine.high %v2382_v56, %v2386_v57 }
 0x2b5   :  { %3427 = vmatprep.subr.bf16.mxu1 %v3859_v59  ;;  %v3359_v59 = vcombine.low %v2382_v56, %v2386_v57 }
 0x2b8   :  { %3428 = vmatpush3.bf16.msra.mxu1 %v3860_v60  ;;  %v2374_v60 = vld [vmem:[#allocation14 + $0x100] sm:$0xff] }
 0x2b9   :  { %3429 = vmatprep.subr.bf16.mxu1 %v3861_v61  ;;  %v2378_v61 = vld [vmem:[#allocation14 + $0x120] sm:$0xff] }
 0x2ba   :  { %v3351_v63 = vcombine.low %v2374_v60, %v2378_v61 }
 0x2bc   :  { %3430 = vmatpush3.bf16.msra.mxu1 %v3862_v62  ;;  %v3352_v62 = vcombine.high %v2374_v60, %v2378_v61  ;;  %v2404_v60 = vld [vmem:[#allocation14 + $0x1f0] sm:$0xff]  ;;  %v2401_v61 = vld [vmem:[#allocation14 + $0x1d8] sm:$0xff] }
 0x2bd   :  { %2768 = vmatprep.subr.bf16.mxu1 %v3376_v48  ;;  %v3337_v48 = vcombine.low %v2359_v42, %v2363_v43  ;;  %v2369_v42 = vld [vmem:[#allocation14 + $0xd8] sm:$0xff] }
 0x2be   :  { %v2373_v43 = vld [vmem:[#allocation14 + $0xf8] sm:$0xff] }
 0x33f   :  { %v1962_v12 = vpop.f32.mrf.mxu1  ;;  %v2003_v13 = vpop.f32.mrf.mxu0 }
 0x340   :  { %v1963_v15 = vadd.f32 %v1962_v12, %v1490_v8  ;;  %v2004_v16 = vadd.f32 %v2003_v13, %v1498_v9  ;;  %v3336_v8 = vcombine.high %v2358_v4, %v2362_v6  ;;  %v3335_v9 = vcombine.low %v2358_v4, %v2362_v6  ;;  %v3310_v4 = vld [vmem:[%s4357_s10] ss:$0 sm:$0xff]  ;;  %s4136_s10 = smov [#allocation17]  }
 0x341   :  { %v1964_v20 = vpop.f32.mrf.mxu1  ;;  %v2005_v22 = vpop.f32.mrf.mxu0  ;;  %s3028_s27 = sshll.u32 %s4136_s10, 4  ;;  %s3029_s27 = int_to_ptr.vmem [resolvable:$true] %s3028_s27 }
 0x342   :  { %v2050_v23 = vpack.c.bf16 %v1963_v15, %v1963_v15  ;;  %3004 = vst [vmem:[#allocation17] sm:$0xff] %v1963_v15  ;;  %3009 = vst [vmem:[#allocation17 + $0x28] sm:$0xff] %v1963_v15  ;;  %v2987_v24 = vmul.f32 %v3391_v14, %v2004_v16  ;;  %v1965_v25 = vadd.f32 %v1964_v20, %v1494_v10  ;;  %v2350_v10 = vld [vmem:[#allocation14 + $0x40] sm:$0xff]  ;;  %v3293_v15 = vld [vmem:[%s4355_s8] ss:$0 sm:$0xff]  ;;  %s4063_s4 = scalar_lea.vmem %s3029_s27, 1024  ;;  %p4068_p13 = scmp.lt.s32.totalorder %s3029_s27, %s3029_s27 }
 0x343   :  { %3006 = vst [vmem:[#allocation17 + $0x10] sm:$0xff] %v2004_v16  ;;  %3010 = vst [vmem:[#allocation17 + $0x30] sm:$0xff] %v2004_v16  ;;  %v2006_v26 = vadd.f32 %v2005_v22, %v1502_v11  ;;  %v1966_v27 = vpop.f32.mrf.mxu1  ;;  %v2007_v28 = vpop.f32.mrf.mxu0  ;;  %v2051_v29 = vpack.c.bf16 %v2004_v16, %v2004_v16  ;;  %v2354_v11 = vld [vmem:[#allocation14 + $0x60] sm:$0xff]  ;;  %p4064_p12 = scmp.ne.s32.totalorder %s3029_s27, %s4063_s4  ;;  %p4069_p0 = scmp.lt.s32.totalorder %s4063_s4, %s4063_s4 }
 0x344   :  { %v2995_v30 = vadd.f32 %v3392_v17, %v2987_v24  ;;  %3005 = vst [vmem:[#allocation17 + $0x8] sm:$0xff] %v1965_v25  ;;  %v3328_v12 = vcombine.high %v2350_v10, %v2354_v11  ;;  %v3327_v13 = vcombine.low %v2350_v10, %v2354_v11  ;;  %v2391_v24 = vld [vmem:[#allocation14 + $0x188] sm:$0xff]  ;;  %v2396_v11 = vld [vmem:[#allocation14 + $0x1b0] sm:$0xff] }
 0x345   :  { %3007 = vst [vmem:[#allocation17 + $0x18] sm:$0xff] %v2006_v26  ;;  %2219 = vmatprep.mubr.bf16.mxu1 %v2051_v29  ;;  %v1967_v31 = vpop.f32.mrf.mxu1  ;;  %v2008_v32 = vpop.f32.mrf.mxu0  ;;  %v2395_v25 = vld [vmem:[#allocation14 + $0x1a8] sm:$0xff]  ;;  %p4070_p1 = por %p4069_p0, %p4068_p13 }
 0x346   :  { %3011 = vst [vmem:[#allocation17 + $0x38] sm:$0xff] %v2995_v30  ;;  %2220 = vmatmul.mubr.bf16.vlgmr.msra.gmra.mxu1 %v2050_v23  ;;  %v3370_v28 = vcombine.high %v2391_v24, %v2395_v25  ;;  %v2383_v29 = vld [vmem:[#allocation14 + $0x148] sm:$0xff]  ;;  %v3369_v31 = vcombine.low %v2391_v24, %v2395_v25  ;;  %v2388_v24 = vld [vmem:[#allocation14 + $0x170] sm:$0xff]  ;;  %v2385_v25 = vld [vmem:[#allocation14 + $0x158] sm:$0xff] }
 0x347   :  { %2769 = vmatpush1.bf16.msra.mxu1 %v3375_v47  ;;  %v2387_v30 = vld [vmem:[#allocation14 + $0x168] sm:$0xff]  ;;  %p4071_p2 = pnand %p4070_p1, %p4064_p12 }
 0x348   :  { %2770 = vmatprep.subr.bf16.mxu1 %v3368_v54  ;;  %v3362_v32 = vcombine.high %v2383_v29, %v2387_v30  ;;  %v2355_v47 = vld [vmem:[#allocation14 + $0x68] sm:$0xff] }
 0x349   :  { %v3330_v49 = vcombine.high %v2351_v46, %v2355_v47  ;;  %v3329_v50 = vcombine.low %v2351_v46, %v2355_v47  ;;  %v3350_v47 = vcombine.high %v2369_v42, %v2373_v43 }
 0x34b   :  { %2771 = vmatpush1.bf16.msra.mxu1 %v3367_v55  ;;  %v2347_v55 = vld [vmem:[#allocation14 + $0x28] sm:$0xff] }
 0x34c   :  { %2772 = vmatprep.subr.bf16.mxu1 %v3360_v58  ;;  %v3321_v57 = vcombine.low %v2343_v53, %v2347_v55  ;;  %v3322_v58 = vcombine.high %v2343_v53, %v2347_v55  ;;  %v3349_v53 = vcombine.low %v2369_v42, %v2373_v43 }
 0x34f   :  { %2773 = vmatpush1.bf16.msra.mxu1 %v3359_v59  ;;  %v2400_v59 = vld [vmem:[#allocation14 + $0x1d0] sm:$0xff] }
 0x350   :  { %2774 = vmatprep.subr.bf16.mxu1 %v3352_v62  ;;  %v3380_v62 = vcombine.high %v2400_v59, %v2404_v60  ;;  %v3379_v0 = vcombine.low %v2400_v59, %v2404_v60  ;;  %v2357_v59 = vld [vmem:[#allocation14 + $0x78] sm:$0xff] }
 0x353   :  { %2775 = vmatpush1.bf16.msra.mxu1 %v3351_v63  ;;  %v2405_v63 = vld [vmem:[#allocation14 + $0x1f8] sm:$0xff] }
 0x354   :  { %2776 = vmatprep.subr.bf16.mxu1 %v3344_v2  ;;  %v3381_v1 = vcombine.low %v2401_v61, %v2405_v63  ;;  %v3382_v2 = vcombine.high %v2401_v61, %v2405_v63 }
 0x357   :  { %2777 = vmatpush1.bf16.msra.mxu1 %v3343_v3  ;;  %v4135_v3 = vmov 0  }
 0x358   :  { %2778 = vmatprep.subr.bf16.mxu1 %v3336_v8  ;;  %2800 = vmatprep.mubr.bf16.mxu1 %v4135_v3 }
 0x35b   :  { %2779 = vmatpush1.bf16.msra.mxu1 %v3335_v9  ;;  %v2392_v9 = vld [vmem:[#allocation14 + $0x190] sm:$0xff] }
 0x35c   :  { %2780 = vmatprep.subr.bf16.mxu1 %v3328_v12  ;;  %v2393_v12 = vld [vmem:[#allocation14 + $0x198] sm:$0xff] }
 0x35f   :  { %v3409_v34 = vpop.f32.mrf.mxu1  ;;  %2781 = vmatpush1.bf16.msra.mxu1 %v3327_v13  ;;  %v2397_v13 = vld [vmem:[#allocation14 + $0x1b8] sm:$0xff] }
 0x361   :  { %v3410_v36 = vpop.f32.mrf.mxu1 }
 0x362   :  { %v3411_v37 = vadd.f32 %v3410_v36, %v3409_v34  ;;  %v2375_v34 = vld [vmem:[#allocation14 + $0x108] sm:$0xff]  ;;  %v3361_v36 = vcombine.low %v2383_v29, %v2387_v30 }
 0x363   :  { %v3412_v38 = vpop.f32.mrf.mxu1 }
 0x364   :  { %v2045_v39 = vadd.f32 %v3411_v37, %v1506_v35  ;;  %v2379_v35 = vld [vmem:[#allocation14 + $0x128] sm:$0xff] }
 0x365   :  { %v3413_v40 = vpop.f32.mrf.mxu1  ;;  %v3354_v37 = vcombine.high %v2375_v34, %v2379_v35  ;;  %v2367_v38 = vld [vmem:[#allocation14 + $0xc8] sm:$0xff] }
 0x366   :  { %3008 = vst [vmem:[#allocation17 + $0x20] sm:$0xff] %v2045_v39  ;;  %v2371_v39 = vld [vmem:[#allocation14 + $0xe8] sm:$0xff]  ;;  %v3353_v40 = vcombine.low %v2375_v34, %v2379_v35  ;;  %v2377_v34 = vld [vmem:[#allocation14 + $0x118] sm:$0xff] }
 0x367   :  { %v3346_v41 = vcombine.high %v2367_v38, %v2371_v39  ;;  %v3345_v44 = vcombine.low %v2367_v38, %v2371_v39  ;;  %v2381_v35 = vld [vmem:[#allocation14 + $0x138] sm:$0xff] }
 0x368   :  { %v3358_v39 = vcombine.high %v2377_v34, %v2381_v35 }
 0x406   :  { %v3431_v14 = vpop.f32.mrf.mxu1 }
 0x408   :  { %v3432_v16 = vpop.f32.mrf.mxu1 }
 0x409   :  { %v3433_v17 = vadd.f32 %v3432_v16, %v3431_v14 }
 0x40a   :  { %v3434_v20 = vpop.f32.mrf.mxu1 }
 0x40b   :  { %v2222_v22 = vadd.f32 %v3433_v17, %v3293_v15  ;;  %v3372_v17 = vcombine.high %v2392_v9, %v2396_v11  ;;  %v3374_v20 = vcombine.high %v2393_v12, %v2397_v13 }
 0x40c   :  { %v3435_v23 = vpop.f32.mrf.mxu1 }
 0x40d   :  { %v2227_v26 = vmax.f32 %v2222_v22, 0.0  ;;  %v2384_v22 = vld [vmem:[#allocation14 + $0x150] sm:$0xff] }
 0x40e   :  { %v3364_v29 = vcombine.high %v2384_v22, %v2388_v24 }
 0x40f   :  { %v2228_v27 = vpack.c.bf16 %v2227_v26, %v2227_v26  ;;  %v2389_v26 = vld [vmem:[#allocation14 + $0x178] sm:$0xff] }
 0x410   :  { %v3366_v30 = vcombine.high %v2385_v25, %v2389_v26 }
 0x411   :  { %3463 = vmatmul.mubr.bf16.vlgmr.msra.gmra.mxu0 %v2228_v27  ;;  %v3371_v27 = vcombine.low %v2392_v9, %v2396_v11 }
 0x412   :  { %2810 = vmatpush1.bf16.msra.mxu0 %v3377_v52  ;;  %v2346_v52 = vld [vmem:[#allocation14 + $0x20] sm:$0xff]  ;;  %2841 = vmatprep.mubr.bf16.mxu0 %v4135_v3 }
 0x413   :  { %2811 = vmatprep.subr.bf16.mxu0 %v3370_v28  ;;  %v3320_v54 = vcombine.high %v2342_v51, %v2346_v52  ;;  %v3319_v56 = vcombine.low %v2342_v51, %v2346_v52  ;;  %v3373_v28 = vcombine.low %v2393_v12, %v2397_v13  ;;  %v2365_v51 = vld [vmem:[#allocation14 + $0xb8] sm:$0xff] }
 0x415   :  { %2782 = vmatprep.subr.bf16.mxu1 %v3320_v54 }
 0x416   :  { %2812 = vmatpush1.bf16.msra.mxu0 %v3369_v31  ;;  %2783 = vmatpush1.bf16.msra.mxu1 %v3319_v56  ;;  %v2376_v31 = vld [vmem:[#allocation14 + $0x110] sm:$0xff] }
 0x417   :  { %2813 = vmatprep.subr.bf16.mxu0 %v3362_v32  ;;  %2850 = vmatprep.subr.bf16.mxu1 %v3380_v62  ;;  %v2380_v32 = vld [vmem:[#allocation14 + $0x130] sm:$0xff] }
 0x418   :  { %v3356_v38 = vcombine.high %v2376_v31, %v2380_v32  ;;  %v2352_v56 = vld [vmem:[#allocation14 + $0x50] sm:$0xff] }
 0x41a   :  { %2814 = vmatpush1.bf16.msra.mxu0 %v3361_v36  ;;  %v3363_v36 = vcombine.low %v2384_v22, %v2388_v24 }
 0x41b   :  { %2815 = vmatprep.subr.bf16.mxu0 %v3354_v37  ;;  %v3365_v37 = vcombine.low %v2385_v25, %v2389_v26 }
 0x41e   :  { %2816 = vmatpush1.bf16.msra.mxu0 %v3353_v40  ;;  %v2368_v40 = vld [vmem:[#allocation14 + $0xd0] sm:$0xff] }
 0x41f   :  { %2817 = vmatprep.subr.bf16.mxu0 %v3346_v41  ;;  %v2372_v41 = vld [vmem:[#allocation14 + $0xf0] sm:$0xff] }
 0x420   :  { %v3348_v46 = vcombine.high %v2368_v40, %v2372_v41  ;;  %v3347_v52 = vcombine.low %v2368_v40, %v2372_v41 }
 0x422   :  { %2818 = vmatpush1.bf16.msra.mxu0 %v3345_v44  ;;  %v3355_v44 = vcombine.low %v2376_v31, %v2380_v32 }
 0x423   :  { %2819 = vmatprep.subr.bf16.mxu0 %v3338_v45  ;;  %v3357_v45 = vcombine.low %v2377_v34, %v2381_v35 }
 0x426   :  { %2820 = vmatpush1.bf16.msra.mxu0 %v3337_v48  ;;  %v2360_v48 = vld [vmem:[#allocation14 + $0x90] sm:$0xff] }
 0x427   :  { %2821 = vmatprep.subr.bf16.mxu0 %v3330_v49  ;;  %v2364_v49 = vld [vmem:[#allocation14 + $0xb0] sm:$0xff] }
 0x428   :  { %v3340_v54 = vcombine.high %v2360_v48, %v2364_v49  ;;  %v3339_v60 = vcombine.low %v2360_v48, %v2364_v49 }
 0x42a   :  { %2822 = vmatpush1.bf16.msra.mxu0 %v3329_v50  ;;  %v2361_v50 = vld [vmem:[#allocation14 + $0x98] sm:$0xff] }
 0x42b   :  { %2823 = vmatprep.subr.bf16.mxu0 %v3322_v58  ;;  %v3342_v55 = vcombine.high %v2361_v50, %v2365_v51  ;;  %v2353_v58 = vld [vmem:[#allocation14 + $0x58] sm:$0xff]  ;;  %v3341_v61 = vcombine.low %v2361_v50, %v2365_v51 }
 0x42c   :  { %v3334_v63 = vcombine.high %v2353_v58, %v2357_v59 }
 0x42e   :  { %2824 = vmatpush1.bf16.msra.mxu0 %v3321_v57  ;;  %v2356_v57 = vld [vmem:[#allocation14 + $0x70] sm:$0xff] }
 0x42f   :  { %2891 = vmatprep.subr.bf16.mxu0 %v3382_v2  ;;  %v3332_v62 = vcombine.high %v2352_v56, %v2356_v57  ;;  %v2345_v2 = vld [vmem:[#allocation14 + $0x18] sm:$0xff] }
 0x4d1   :  { %v2334_v6 = vpop.f32.mrf.mxu0 }
 0x4d2   :  { %v2335_v8 = vadd.f32 %v3310_v4, %v2334_v6  ;;  %v3331_v4 = vcombine.low %v2352_v56, %v2356_v57  ;;  %v3333_v6 = vcombine.low %v2353_v58, %v2357_v59 }
 0x4d3   :  { %v3464_v10 = vpop.f32.mrf.mxu0 }
 0x4d4   :  { %v2340_v14 = vmax.f32 %v2335_v8, 0.0 }
 0x4d5   :  { %v2337_v15 = vpop.f32.mrf.mxu0 }
 0x4d6   :  { %v4321_v16 = vpack.c.bf16 %v2340_v14, %v2340_v14 }
 0x4d7   :  { %v3465_v23 = vpop.f32.mrf.mxu0 }
 0x4d8   :  { %2801 = vmatmul.mubr.bf16.vlgmr.msra.gmra.mxu1 %v4321_v16  ;;  %2842 = vmatmul.mubr.bf16.vlgmr.msra.gmra.mxu0 %v4321_v16 }
 0x4d9   :  { %2851 = vmatpush1.bf16.msra.mxu1 %v3379_v0  ;;  %2892 = vmatpush1.bf16.msra.mxu0 %v3381_v1  ;;  %v2344_v0 = vld [vmem:[#allocation14 + $0x10] sm:$0xff] }
 0x4da   :  { %2852 = vmatprep.subr.bf16.mxu1 %v3372_v17  ;;  %2893 = vmatprep.subr.bf16.mxu0 %v3374_v20  ;;  %v2348_v1 = vld [vmem:[#allocation14 + $0x30] sm:$0xff] }
 0x4db   :  { %2882 = vmatprep.mubr.bf16.mxu1 %v4135_v3  ;;  %2923 = vmatprep.mubr.bf16.mxu0 %v4135_v3  ;;  %v2349_v3 = vld [vmem:[#allocation14 + $0x38] sm:$0xff]  ;;  %v3324_v8 = vcombine.high %v2344_v0, %v2348_v1  ;;  %v3323_v10 = vcombine.low %v2344_v0, %v2348_v1 }
 0x4dc   :  { %v3326_v9 = vcombine.high %v2345_v2, %v2349_v3  ;;  %v3325_v11 = vcombine.low %v2345_v2, %v2349_v3 }
 0x4dd   :  { %2853 = vmatpush1.bf16.msra.mxu1 %v3371_v27  ;;  %2894 = vmatpush1.bf16.msra.mxu0 %v3373_v28 }
 0x4de   :  { %2854 = vmatprep.subr.bf16.mxu1 %v3364_v29  ;;  %2895 = vmatprep.subr.bf16.mxu0 %v3366_v30 }
 0x4e1   :  { %2855 = vmatpush1.bf16.msra.mxu1 %v3363_v36  ;;  %2896 = vmatpush1.bf16.msra.mxu0 %v3365_v37 }
 0x4e2   :  { %2856 = vmatprep.subr.bf16.mxu1 %v3356_v38  ;;  %2897 = vmatprep.subr.bf16.mxu0 %v3358_v39 }
 0x4e5   :  { %2857 = vmatpush1.bf16.msra.mxu1 %v3355_v44  ;;  %2898 = vmatpush1.bf16.msra.mxu0 %v3357_v45 }
 0x4e6   :  { %2858 = vmatprep.subr.bf16.mxu1 %v3348_v46  ;;  %2899 = vmatprep.subr.bf16.mxu0 %v3350_v47 }
 0x4e9   :  { %2859 = vmatpush1.bf16.msra.mxu1 %v3347_v52  ;;  %2900 = vmatpush1.bf16.msra.mxu0 %v3349_v53 }
 0x4ea   :  { %2860 = vmatprep.subr.bf16.mxu1 %v3340_v54  ;;  %2901 = vmatprep.subr.bf16.mxu0 %v3342_v55 }
 0x4ed   :  { %2861 = vmatpush1.bf16.msra.mxu1 %v3339_v60  ;;  %2902 = vmatpush1.bf16.msra.mxu0 %v3341_v61 }
 0x4ee   :  { %2862 = vmatprep.subr.bf16.mxu1 %v3332_v62  ;;  %2903 = vmatprep.subr.bf16.mxu0 %v3334_v63 }
 0x4f1   :  { %2863 = vmatpush1.bf16.msra.mxu1 %v3331_v4  ;;  %2904 = vmatpush1.bf16.msra.mxu0 %v3333_v6 }
 0x4f2   :  { %2864 = vmatprep.subr.bf16.mxu1 %v3324_v8  ;;  %2905 = vmatprep.subr.bf16.mxu0 %v3326_v9 }
 0x4f5   :  { %2865 = vmatpush1.bf16.msra.mxu1 %v3323_v10  ;;  %2906 = vmatpush1.bf16.msra.mxu0 %v3325_v11 }
 0x4f8   :  { %2883 = vmatmul.mubr.bf16.vlgmr.msra.gmra.mxu1 %v4321_v16  ;;  %2924 = vmatmul.mubr.bf16.vlgmr.msra.gmra.mxu0 %v4321_v16 }
 0x4f9   :  { %4074 = shalt.err (!%p4071_p2)
}
 0x4fa   :  { %3031 = dma.vmem_to_hbm [thread:$0]  %s3029_s27, 1024, %s4363_s16, [#allocation18]   ;;  %v2406_v12 = vld [vmem:[%s4359_s12] sm:$0xff]  ;;  %v2434_v41 = vsub.s32 6, %v4271_v18  ;;  %v2430_v42 = vsub.s32 5, %v4271_v18  ;;  %v2438_v43 = vsub.s32 7, %v4271_v18 }
 0x4fb   :  { %v2411_v13 = vrot.slane %v2406_v12, %v4274_v19  ;;  %v2419_v14 = vrot.slane %v2406_v12, %v1497_v5  ;;  %v2415_v15 = vrot.slane %v2406_v12, %v4280_v21  ;;  %v2423_v16 = vrot.slane %v2406_v12, %v1501_v7  ;;  %s4137_s12 = smov [#allocation16]  }
 0x4fc   :  { %v2427_v44 = vrot.slane %v2406_v12, %v1505_v33  ;;  %v2435_v45 = vrot.slane %v2406_v12, %v2434_v41  ;;  %v2431_v46 = vrot.slane %v2406_v12, %v2430_v42  ;;  %v2439_v47 = vrot.slane %v2406_v12, %v2438_v43  ;;  %s3018_s16 = sshll.u32 %s4137_s12, 4  ;;  %s3019_s16 = int_to_ptr.vmem [resolvable:$true] %s3018_s16 }
 0x4fd   :  { %s4083_s3 = scalar_lea.vmem %s3019_s16, 1024  ;;  %p4088_p4 = scmp.lt.s32.totalorder %s3019_s16, %s3019_s16 }
 0x4fe   :  { %p4084_p3 = scmp.ne.s32.totalorder %s3019_s16, %s4083_s3  ;;  %p4089_p5 = scmp.lt.s32.totalorder %s4083_s3, %s4083_s3 }
 0x500   :  { %p4090_p6 = por %p4089_p5, %p4088_p4 }
 0x502   :  { %p4091_p7 = pnand %p4090_p6, %p4084_p3 }
 0x598   :  { %v2802_v17 = vpop.f32.mrf.mxu1  ;;  %v2843_v20 = vpop.f32.mrf.mxu0 }
 0x599   :  { %v2803_v22 = vadd.f32 %v2802_v17, %v2411_v13  ;;  %v2844_v23 = vadd.f32 %v2843_v20, %v2419_v14 }
 0x59a   :  { %v2804_v24 = vpop.f32.mrf.mxu1  ;;  %v2845_v25 = vpop.f32.mrf.mxu0 }
 0x59b   :  { %v3383_v26 = vmul.f32 -1.442695, %v2803_v22  ;;  %v3385_v27 = vmul.f32 -1.442695, %v2844_v23  ;;  %v2805_v28 = vadd.f32 %v2804_v24, %v2415_v15  ;;  %v2846_v29 = vadd.f32 %v2845_v25, %v2423_v16 }
 0x59c   :  { %v2806_v30 = vpop.f32.mrf.mxu1  ;;  %v2847_v19 = vpop.f32.mrf.mxu0 }
 0x59d   :  { %3871 = vpow2.f32 %v3383_v26  ;;  %v3384_v31 = vmul.f32 -1.442695, %v2805_v28  ;;  %v3386_v5 = vmul.f32 -1.442695, %v2846_v29 }
 0x59e   :  { %3873 = vpow2.f32 %v3385_v27  ;;  %v2807_v21 = vpop.f32.mrf.mxu1  ;;  %v2848_v32 = vpop.f32.mrf.mxu0 }
 0x59f   :  { %3875 = vpow2.f32 %v3384_v31 }
 0x5a0   :  { %3877 = vpow2.f32 %v3386_v5 }
 0x5aa   :  { %v3872_v7 = vpop.eup %3871 }
 0x5ab   :  { %v3874_v34 = vpop.eup %3873  ;;  %v2956_v35 = vadd.f32 1.0, %v3872_v7 }
 0x5ac   :  { %v3876_v36 = vpop.eup %3875  ;;  %v2958_v37 = vadd.f32 1.0, %v3874_v34 }
 0x5ad   :  { %v3878_v38 = vpop.eup %3877  ;;  %3879 = vrcp.f32 %v2956_v35  ;;  %v2957_v39 = vadd.f32 1.0, %v3876_v36 }
 0x5ae   :  { %3881 = vrcp.f32 %v2958_v37  ;;  %v2959_v40 = vadd.f32 1.0, %v3878_v38 }
 0x5af   :  { %3883 = vrcp.f32 %v2957_v39 }
 0x5b0   :  { %3885 = vrcp.f32 %v2959_v40 }
 0x5b8   :  { %v2884_v48 = vpop.f32.mrf.mxu1  ;;  %v2925_v49 = vpop.f32.mrf.mxu0 }
 0x5b9   :  { %v2885_v50 = vadd.f32 %v2884_v48, %v2427_v44  ;;  %v2926_v51 = vadd.f32 %v2925_v49, %v2435_v45 }
 0x5ba   :  { %v3880_v52 = vpop.eup %3879  ;;  %v2886_v53 = vpop.f32.mrf.mxu1 }
 0x5bb   :  { %v2927_v54 = vpop.f32.mrf.mxu0  ;;  %v3882_v55 = vpop.eup %3881  ;;  %2996 = vst [vmem:[#allocation16] sm:$0xff] %v3880_v52  ;;  %v3387_v56 = vmul.f32 -1.442695, %v2885_v50  ;;  %v3389_v57 = vmul.f32 -1.442695, %v2926_v51  ;;  %v2887_v58 = vadd.f32 %v2886_v53, %v2431_v46 }
 0x5bc   :  { %v2928_v59 = vadd.f32 %v2927_v54, %v2439_v47  ;;  %v3884_v60 = vpop.eup %3883  ;;  %2998 = vst [vmem:[#allocation16 + $0x10] sm:$0xff] %v3882_v55  ;;  %v2888_v18 = vpop.f32.mrf.mxu1 }
 0x5bd   :  { %v2929_v33 = vpop.f32.mrf.mxu0  ;;  %v3886_v61 = vpop.eup %3885  ;;  %2997 = vst [vmem:[#allocation16 + $0x8] sm:$0xff] %v3884_v60  ;;  %3887 = vpow2.f32 %v3387_v56  ;;  %v3388_v62 = vmul.f32 -1.442695, %v2887_v58 }
 0x5be   :  { %v3390_v63 = vmul.f32 -1.442695, %v2928_v59  ;;  %2999 = vst [vmem:[#allocation16 + $0x18] sm:$0xff] %v3886_v61  ;;  %3889 = vpow2.f32 %v3389_v57  ;;  %v2889_v0 = vpop.f32.mrf.mxu1 }
 0x5bf   :  { %v2930_v1 = vpop.f32.mrf.mxu0  ;;  %3891 = vpow2.f32 %v3388_v62 }
 0x5c0   :  { %3893 = vpow2.f32 %v3390_v63 }
 0x5ca   :  { %v3888_v2 = vpop.eup %3887 }
 0x5cb   :  { %v3890_v3 = vpop.eup %3889  ;;  %v2960_v4 = vadd.f32 1.0, %v3888_v2 }
 0x5cc   :  { %v3892_v6 = vpop.eup %3891  ;;  %v2962_v8 = vadd.f32 1.0, %v3890_v3 }
 0x5cd   :  { %v3894_v9 = vpop.eup %3893  ;;  %3895 = vrcp.f32 %v2960_v4  ;;  %v2961_v10 = vadd.f32 1.0, %v3892_v6 }
 0x5ce   :  { %3897 = vrcp.f32 %v2962_v8  ;;  %v2963_v11 = vadd.f32 1.0, %v3894_v9 }
 0x5cf   :  { %3899 = vrcp.f32 %v2961_v10 }
 0x5d0   :  { %3901 = vrcp.f32 %v2963_v11 }
 0x5da   :  { %v3896_v12 = vpop.eup %3895 }
 0x5db   :  { %v3898_v13 = vpop.eup %3897  ;;  %3000 = vst [vmem:[#allocation16 + $0x20] sm:$0xff] %v3896_v12 }
 0x5dc   :  { %v3900_v14 = vpop.eup %3899  ;;  %3002 = vst [vmem:[#allocation16 + $0x30] sm:$0xff] %v3898_v13 }
 0x5dd   :  { %v3902_v15 = vpop.eup %3901  ;;  %3001 = vst [vmem:[#allocation16 + $0x28] sm:$0xff] %v3900_v14 }
 0x5de   :  { %3003 = vst [vmem:[#allocation16 + $0x38] sm:$0xff] %v3902_v15 }
 0x5df   :  { %4094 = shalt.err (!%p4091_p7)
}
 0x5e0   :  { %3021 = dma.vmem_to_hbm [thread:$0]  %s3019_s16, 1024, %s4362_s15, [#allocation4]  }
 0x5e1   :  { %4113 = dma.done.wait [#allocation4], 1024  }
 0x5e2   :  { %4114 = vsyncadd [#allocation4], 4294966272 }
 0x5e3   :  { %4115 = dma.done.wait [#allocation18], 1024  }
 0x5e4   :  { %4116 = vsyncadd [#allocation18], 4294966272 }
 0x5e5   :  { %3038 = vsyncpa [#allocation3], 1 }
 0x5e6   :  { %3039 = vsyncpa [#allocation6], 1 }
 0x5e7   :  { %3040 = vsyncpa [#allocation9], 1 }
 0x5e8   :  { %3041 = vsyncpa [#allocation12], 1 }
 0x5e9   :  { %3042 = vsyncpa [#allocation15], 1 }
 0x5ea   :  { %3043 = vsyncpa [#allocation4], 1 }
 0x5eb   :  { %3044 = vsyncpa [#allocation18], 1 }

</bundles_post_ra>
